<compile_context>
chip_gen: v6e
topology: v6e:2x2x1
jax: 0.10.0
libtpu: 0.0.40
codegen_flags: <defaults>
</compile_context>

<pallas_src>
from functools import partial

import numpy as np
import jax
import jax.numpy as jnp
from jax import lax
from jax.experimental import pallas as pl
from jax.experimental.pallas import tpu as pltpu

NEG_SLOPE = 0.01            # nn.LeakyReLU default
EPS = 1e-5                  # nn.GroupNorm default
NUM_GROUPS = 4
OUT_PAD = 8                 # padded output width (real outputs live in lanes 0..1)
DEFAULT_TB = 2048           # batch tile
VMEM_LIMIT = 32 * 1024 * 1024


def _leaky_relu(x):
    # max(x, 0.01*x) == LeakyReLU(0.01): 2 VPU ops instead of cmp+mul+select.
    return jnp.maximum(x, NEG_SLOPE * x)


def _group_norm(h, gamma, beta, m, mt):
    """GroupNorm(4, C) on (TB, C) f32 activations (spatial extent is 1x1).

    `m`  : (C, G) bf16 0/1 group-membership matrix -> per-group sums on the MXU
           with bf16 operands / f32 accumulation.
    `mt` : (G, C) f32 0/1 masks -> boolean selects broadcast the fused per-group
           (scale, shift) back to (TB, C) on the VPU.
    """
    C = h.shape[-1]
    inv_gs = 1.0 / (C // NUM_GROUPS)

    hb = h.astype(jnp.bfloat16)
    h2b = (h * h).astype(jnp.bfloat16)
    sum_g = jnp.dot(hb, m, preferred_element_type=jnp.float32)      # (TB, G)
    sqsum_g = jnp.dot(h2b, m, preferred_element_type=jnp.float32)   # (TB, G)

    mean_g = sum_g * inv_gs
    var_g = jnp.maximum(sqsum_g * inv_gs - mean_g * mean_g, 0.0)    # biased var
    inv_g = lax.rsqrt(var_g + EPS)                                  # (TB, G)
    scale_g = inv_g
    shift_g = -mean_g * inv_g                                       # tiny (TB, G)

    mask = mt > 0.5                                                 # (G, C) bool, tiny
    scale = jnp.zeros_like(h)
    shift = jnp.zeros_like(h)
    for g in range(NUM_GROUPS):                                     # static unroll (4)
        mg = mask[g:g + 1, :]                                       # (1, C)
        scale = jnp.where(mg, scale_g[:, g:g + 1], scale)
        shift = jnp.where(mg, shift_g[:, g:g + 1], shift)
    return (h * scale + shift) * gamma + beta


def offnet_kernel(x1_ref, x2_ref,
                  w1a_ref, w1b_ref, g1_ref, b1_ref, m1_ref, mt1_ref,
                  w2_ref, g2_ref, b2_ref, m2_ref, mt2_ref,
                  w3_ref, g3_ref, b3_ref, m3_ref, mt3_ref,
                  wo_ref, bo_ref,
                  out_ref):
    # layer1: split 1x1 conv (no bias); inputs stream as f32 and are cast to
    # bf16 in-kernel (f32 acc on the MXU) -> GN(4) -> LeakyReLU.
    x1 = x1_ref[...].astype(jnp.bfloat16)
    x2 = x2_ref[...].astype(jnp.bfloat16)
    h = (jnp.dot(x1, w1a_ref[...], preferred_element_type=jnp.float32)
         + jnp.dot(x2, w1b_ref[...], preferred_element_type=jnp.float32))
    # TODO(synk): if profiling shows MXU-bound on v6e/v7x, pack x1/x2 into a
    # (TB, 128) VMEM scratch and fold layer1 into a single K=128 dot.
    h = _leaky_relu(_group_norm(h, g1_ref[...], b1_ref[...], m1_ref[...], mt1_ref[...]))

    # layer2: 1x1 conv (no bias) -> GN(4) -> LeakyReLU
    h = jnp.dot(h.astype(jnp.bfloat16), w2_ref[...], preferred_element_type=jnp.float32)
    h = _leaky_relu(_group_norm(h, g2_ref[...], b2_ref[...], m2_ref[...], mt2_ref[...]))

    # layer3: 1x1 conv (no bias) -> GN(4) -> LeakyReLU
    h = jnp.dot(h.astype(jnp.bfloat16), w3_ref[...], preferred_element_type=jnp.float32)
    h = _leaky_relu(_group_norm(h, g3_ref[...], b3_ref[...], m3_ref[...], mt3_ref[...]))

    # layer_out: 1x1 conv with bias; wo/bo are zero-padded to OUT_PAD lanes so
    # the (TB, 8) writeback stays contiguous and tiny.
    out = jnp.dot(h.astype(jnp.bfloat16), wo_ref[...], preferred_element_type=jnp.float32)
    out_ref[...] = (out + bo_ref[...]).astype(out_ref.dtype)


def _const_spec(shape):
    n = len(shape)
    return pl.BlockSpec(shape, lambda i: (0,) * n)


def _group_masks(C):
    gs = C // NUM_GROUPS
    m = (np.arange(C)[:, None] // gs == np.arange(NUM_GROUPS)[None, :]).astype(np.float32)
    return (jnp.asarray(m, dtype=jnp.bfloat16),                        # (C, G) for MXU stats
            jnp.asarray(np.ascontiguousarray(m.T), dtype=jnp.float32))  # (G, C) for selects


def _prep_kernel_params(params):
    """bf16 matmul weights, split w1, lane-padded output head, group masks."""
    D = params["w2"].shape[1]            # w2: (2D, D)
    C1 = 2 * D

    w1 = params["w1"].astype(jnp.bfloat16)                            # (2D, 2D)
    wo = params["wo"].astype(jnp.bfloat16)                            # (D/2, 2)
    wo_pad = jnp.zeros((D // 2, OUT_PAD), jnp.bfloat16).at[:, :2].set(wo)
    bo_pad = jnp.zeros((1, OUT_PAD), jnp.float32).at[:, :2].set(params["bo"])

    m1, mt1 = _group_masks(C1)
    m2, mt2 = _group_masks(D)
    m3, mt3 = _group_masks(D // 2)

    return dict(
        w1a=w1[:D, :], w1b=w1[D:, :],
        g1=params["g1"], b1=params["b1"], m1=m1, mt1=mt1,
        w2=params["w2"].astype(jnp.bfloat16),
        g2=params["g2"], b2=params["b2"], m2=m2, mt2=mt2,
        w3=params["w3"].astype(jnp.bfloat16),
        g3=params["g3"], b3=params["b3"], m3=m3, mt3=mt3,
        wo_pad=wo_pad, bo_pad=bo_pad,
    )


@partial(jax.jit, static_argnames=("tb",))
def offnet_forward(x1, x2, params, tb=DEFAULT_TB):
    """x1, x2: (B, D, 1, 1) NCHW descriptors.  Returns (B, 2) offsets."""
    B, D = x1.shape[0], x1.shape[1]

    x1f = x1.reshape(B, D)      # kept f32; cast to bf16 happens inside the kernel
    x2f = x2.reshape(B, D)

    # Batch tiling: pad B up to a sublane-friendly multiple of the tile.
    b8 = ((B + 7) // 8) * 8
    tb = min(tb, b8)
    # Prefer >= 2 grid steps so the "parallel" axis can split across both
    # TensorCores on v7x (and amortize nothing for tiny test batches).
    if b8 // tb < 2 and b8 >= 16:
        tb = ((b8 // 2 + 7) // 8) * 8
    b_pad = ((b8 + tb - 1) // tb) * tb
    if b_pad != B:
        pad = ((0, b_pad - B), (0, 0))
        x1f = jnp.pad(x1f, pad)
        x2f = jnp.pad(x2f, pad)

    kp = _prep_kernel_params(params)
    args = (
        x1f, x2f,
        kp["w1a"], kp["w1b"], kp["g1"], kp["b1"], kp["m1"], kp["mt1"],
        kp["w2"], kp["g2"], kp["b2"], kp["m2"], kp["mt2"],
        kp["w3"], kp["g3"], kp["b3"], kp["m3"], kp["mt3"],
        kp["wo_pad"], kp["bo_pad"],
    )

    in_specs = [
        pl.BlockSpec((tb, D), lambda i: (i, 0)),   # x1: streamed, double-buffered
        pl.BlockSpec((tb, D), lambda i: (i, 0)),   # x2: streamed, double-buffered
    ]
    in_specs += [_const_spec(a.shape) for a in args[2:]]  # weights: VMEM-resident

    out = pl.pallas_call(
        offnet_kernel,
        out_shape=jax.ShapeDtypeStruct((b_pad, OUT_PAD), jnp.float32),
        grid=(b_pad // tb,),
        in_specs=in_specs,
        out_specs=pl.BlockSpec((tb, OUT_PAD), lambda i: (i, 0)),
        compiler_params=pltpu.CompilerParams(
            dimension_semantics=("parallel",),
            vmem_limit_bytes=VMEM_LIMIT),
    )(*args)
    return out[:B, :2]


def init_params(key, descriptor_size=64):
    D = descriptor_size
    C1 = 2 * D
    ks = jax.random.split(key, 8)

    def winit(k, cin, cout):
        return jax.random.normal(k, (cin, cout), jnp.float32) * (1.0 / jnp.sqrt(cin))

    return {
        "w1": winit(ks[0], C1, C1),
        "g1": 1.0 + 0.1 * jax.random.normal(ks[1], (1, C1), jnp.float32),
        "b1": 0.1 * jax.random.normal(ks[2], (1, C1), jnp.float32),
        "w2": winit(ks[3], C1, D),
        "g2": jnp.ones((1, D), jnp.float32),
        "b2": jnp.zeros((1, D), jnp.float32),
        "w3": winit(ks[4], D, D // 2),
        "g3": jnp.ones((1, D // 2), jnp.float32),
        "b3": jnp.zeros((1, D // 2), jnp.float32),
        "wo": winit(ks[5], D // 2, 2),
        "bo": 0.05 * jax.random.normal(ks[6], (1, 2), jnp.float32),
    }


def offnet_reference(x1, x2, params):
    """Pure-JAX reference mirroring the PyTorch forward (bf16 matmul operands,
    f32 accumulation; GroupNorm statistics in full f32, centered formulation)."""
    B, D = x1.shape[0], x1.shape[1]
    x1f = x1.reshape(B, D)
    x2f = x2.reshape(B, D)

    def bdot(a, w):
        return jnp.dot(a.astype(jnp.bfloat16), w.astype(jnp.bfloat16),
                       preferred_element_type=jnp.float32)

    def gn(h, gamma, beta):
        C = h.shape[-1]
        hg = h.reshape(B, NUM_GROUPS, C // NUM_GROUPS)
        mean = hg.mean(-1, keepdims=True)
        var = ((hg - mean) ** 2).mean(-1, keepdims=True)
        hn = ((hg - mean) / jnp.sqrt(var + EPS)).reshape(B, C)
        return hn * gamma + beta

    def lrelu(v):
        return jnp.where(v >= 0, v, NEG_SLOPE * v)

    w1a, w1b = params["w1"][:D, :], params["w1"][D:, :]
    h = bdot(x1f, w1a) + bdot(x2f, w1b)
    h = lrelu(gn(h, params["g1"], params["b1"]))
    h = lrelu(gn(bdot(h, params["w2"]), params["g2"], params["b2"]))
    h = lrelu(gn(bdot(h, params["w3"]), params["g3"], params["b3"]))
    return bdot(h, params["wo"]) + params["bo"]


if __name__ == "__main__":
    B = 8
    D = 64  # descriptor_size (module default)

    key = jax.random.PRNGKey(0)
    k1, k2, kp = jax.random.split(key, 3)
    x1 = jax.random.normal(k1, (B, D, 1, 1), jnp.float32)
    x2 = jax.random.normal(k2, (B, D, 1, 1), jnp.float32)
    params = init_params(kp, D)

    out = offnet_forward(x1, x2, params)
    jax.block_until_ready(out)

    ref = offnet_reference(x1, x2, params)
    assert out.shape == (B, 2), out.shape
    assert jnp.allclose(out, ref, rtol=1e-2, atol=1e-2), (
        f"max abs diff = {float(jnp.max(jnp.abs(out - ref)))}")

    print("KERNEL_OK")
</pallas_src>

<mosaic_0001>
module attributes {stable_mosaic.version = 11 : i64} {
  func.func @offnet_kernel(%arg0: i32, %arg1: memref<8x64xf32, #tpu.memory_space<vmem>>, %arg2: memref<8x64xf32, #tpu.memory_space<vmem>>, %arg3: memref<64x128xbf16, #tpu.memory_space<vmem>>, %arg4: memref<64x128xbf16, #tpu.memory_space<vmem>>, %arg5: memref<1x128xf32, #tpu.memory_space<vmem>>, %arg6: memref<1x128xf32, #tpu.memory_space<vmem>>, %arg7: memref<128x4xbf16, #tpu.memory_space<vmem>>, %arg8: memref<4x128xf32, #tpu.memory_space<vmem>>, %arg9: memref<128x64xbf16, #tpu.memory_space<vmem>>, %arg10: memref<1x64xf32, #tpu.memory_space<vmem>>, %arg11: memref<1x64xf32, #tpu.memory_space<vmem>>, %arg12: memref<64x4xbf16, #tpu.memory_space<vmem>>, %arg13: memref<4x64xf32, #tpu.memory_space<vmem>>, %arg14: memref<64x32xbf16, #tpu.memory_space<vmem>>, %arg15: memref<1x32xf32, #tpu.memory_space<vmem>>, %arg16: memref<1x32xf32, #tpu.memory_space<vmem>>, %arg17: memref<32x4xbf16, #tpu.memory_space<vmem>>, %arg18: memref<4x32xf32, #tpu.memory_space<vmem>>, %arg19: memref<32x8xbf16, #tpu.memory_space<vmem>>, %arg20: memref<1x8xf32, #tpu.memory_space<vmem>>, %arg21: memref<8x8xf32, #tpu.memory_space<vmem>>) attributes {dimension_semantics = [#tpu.dimension_semantics<parallel>], iteration_bounds = array<i64: 1>, scalar_prefetch = 0 : i64, scratch_operands = 0 : i64, tpu.core_type = #tpu.core_type<tc>, window_params = [{transform_indices = @transform_0, window_bounds = array<i64: 8, 64>}, {transform_indices = @transform_1, window_bounds = array<i64: 8, 64>}, {pipeline_mode = #tpu.pipeline_mode<synchronous>, transform_indices = @transform_2, window_bounds = array<i64: 64, 128>}, {pipeline_mode = #tpu.pipeline_mode<synchronous>, transform_indices = @transform_3, window_bounds = array<i64: 64, 128>}, {pipeline_mode = #tpu.pipeline_mode<synchronous>, transform_indices = @transform_4, window_bounds = array<i64: 1, 128>}, {pipeline_mode = #tpu.pipeline_mode<synchronous>, transform_indices = @transform_5, window_bounds = array<i64: 1, 128>}, {pipeline_mode = #tpu.pipeline_mode<synchronous>, transform_indices = @transform_6, window_bounds = array<i64: 128, 4>}, {pipeline_mode = #tpu.pipeline_mode<synchronous>, transform_indices = @transform_7, window_bounds = array<i64: 4, 128>}, {pipeline_mode = #tpu.pipeline_mode<synchronous>, transform_indices = @transform_8, window_bounds = array<i64: 128, 64>}, {pipeline_mode = #tpu.pipeline_mode<synchronous>, transform_indices = @transform_9, window_bounds = array<i64: 1, 64>}, {pipeline_mode = #tpu.pipeline_mode<synchronous>, transform_indices = @transform_10, window_bounds = array<i64: 1, 64>}, {pipeline_mode = #tpu.pipeline_mode<synchronous>, transform_indices = @transform_11, window_bounds = array<i64: 64, 4>}, {pipeline_mode = #tpu.pipeline_mode<synchronous>, transform_indices = @transform_12, window_bounds = array<i64: 4, 64>}, {pipeline_mode = #tpu.pipeline_mode<synchronous>, transform_indices = @transform_13, window_bounds = array<i64: 64, 32>}, {pipeline_mode = #tpu.pipeline_mode<synchronous>, transform_indices = @transform_14, window_bounds = array<i64: 1, 32>}, {pipeline_mode = #tpu.pipeline_mode<synchronous>, transform_indices = @transform_15, window_bounds = array<i64: 1, 32>}, {pipeline_mode = #tpu.pipeline_mode<synchronous>, transform_indices = @transform_16, window_bounds = array<i64: 32, 4>}, {pipeline_mode = #tpu.pipeline_mode<synchronous>, transform_indices = @transform_17, window_bounds = array<i64: 4, 32>}, {pipeline_mode = #tpu.pipeline_mode<synchronous>, transform_indices = @transform_18, window_bounds = array<i64: 32, 8>}, {pipeline_mode = #tpu.pipeline_mode<synchronous>, transform_indices = @transform_19, window_bounds = array<i64: 1, 8>}, {transform_indices = @transform_20, window_bounds = array<i64: 8, 8>}]} {
    %c0 = arith.constant 0 : index
    %c0_0 = arith.constant 0 : index
    %0 = vector.load %arg1[%c0, %c0_0] : memref<8x64xf32, #tpu.memory_space<vmem>>, vector<8x64xf32>
    %1 = arith.truncf %0 : vector<8x64xf32> to vector<8x64xbf16>
    %c0_1 = arith.constant 0 : index
    %c0_2 = arith.constant 0 : index
    %2 = vector.load %arg2[%c0_1, %c0_2] : memref<8x64xf32, #tpu.memory_space<vmem>>, vector<8x64xf32>
    %3 = arith.truncf %2 : vector<8x64xf32> to vector<8x64xbf16>
    %c0_3 = arith.constant 0 : index
    %c0_4 = arith.constant 0 : index
    %4 = vector.load %arg3[%c0_3, %c0_4] : memref<64x128xbf16, #tpu.memory_space<vmem>>, vector<64x128xbf16>
    %cst = arith.constant dense<0.000000e+00> : vector<8x128xf32>
    %5 = tpu.matmul %1, %4, %cst {dimension_numbers = #tpu.dot_dimension_numbers<[1], [0], [0], [1], [0, 0, 1, 1], [], []>} : vector<8x64xbf16>, vector<64x128xbf16>, vector<8x128xf32> -> vector<8x128xf32>
    %c0_5 = arith.constant 0 : index
    %c0_6 = arith.constant 0 : index
    %6 = vector.load %arg4[%c0_5, %c0_6] : memref<64x128xbf16, #tpu.memory_space<vmem>>, vector<64x128xbf16>
    %cst_7 = arith.constant dense<0.000000e+00> : vector<8x128xf32>
    %7 = tpu.matmul %3, %6, %cst_7 {dimension_numbers = #tpu.dot_dimension_numbers<[1], [0], [0], [1], [0, 0, 1, 1], [], []>} : vector<8x64xbf16>, vector<64x128xbf16>, vector<8x128xf32> -> vector<8x128xf32>
    %8 = arith.addf %5, %7 : vector<8x128xf32>
    %c0_8 = arith.constant 0 : index
    %c0_9 = arith.constant 0 : index
    %9 = vector.load %arg5[%c0_8, %c0_9] : memref<1x128xf32, #tpu.memory_space<vmem>>, vector<1x128xf32>
    %c0_10 = arith.constant 0 : index
    %c0_11 = arith.constant 0 : index
    %10 = vector.load %arg6[%c0_10, %c0_11] : memref<1x128xf32, #tpu.memory_space<vmem>>, vector<1x128xf32>
    %c0_12 = arith.constant 0 : index
    %c0_13 = arith.constant 0 : index
    %11 = vector.load %arg7[%c0_12, %c0_13] : memref<128x4xbf16, #tpu.memory_space<vmem>>, vector<128x4xbf16>
    %c0_14 = arith.constant 0 : index
    %c0_15 = arith.constant 0 : index
    %12 = vector.load %arg8[%c0_14, %c0_15] : memref<4x128xf32, #tpu.memory_space<vmem>>, vector<4x128xf32>
    %13 = arith.truncf %8 : vector<8x128xf32> to vector<8x128xbf16>
    %14 = arith.mulf %8, %8 : vector<8x128xf32>
    %15 = arith.truncf %14 : vector<8x128xf32> to vector<8x128xbf16>
    %cst_16 = arith.constant dense<0.000000e+00> : vector<8x4xf32>
    %16 = tpu.matmul %13, %11, %cst_16 {dimension_numbers = #tpu.dot_dimension_numbers<[1], [0], [0], [1], [0, 0, 1, 1], [], []>} : vector<8x128xbf16>, vector<128x4xbf16>, vector<8x4xf32> -> vector<8x4xf32>
    %cst_17 = arith.constant dense<0.000000e+00> : vector<8x4xf32>
    %17 = tpu.matmul %15, %11, %cst_17 {dimension_numbers = #tpu.dot_dimension_numbers<[1], [0], [0], [1], [0, 0, 1, 1], [], []>} : vector<8x128xbf16>, vector<128x4xbf16>, vector<8x4xf32> -> vector<8x4xf32>
    %cst_18 = arith.constant 3.125000e-02 : f32
    %18 = vector.broadcast %cst_18 : f32 to vector<8x4xf32>
    %19 = arith.mulf %16, %18 : vector<8x4xf32>
    %cst_19 = arith.constant 3.125000e-02 : f32
    %20 = vector.broadcast %cst_19 : f32 to vector<8x4xf32>
    %21 = arith.mulf %17, %20 : vector<8x4xf32>
    %22 = arith.mulf %19, %19 : vector<8x4xf32>
    %23 = arith.subf %21, %22 : vector<8x4xf32>
    %cst_20 = arith.constant 0.000000e+00 : f32
    %24 = vector.broadcast %cst_20 : f32 to vector<8x4xf32>
    %25 = arith.maximumf %23, %24 : vector<8x4xf32>
    %cst_21 = arith.constant 9.99999974E-6 : f32
    %26 = vector.broadcast %cst_21 : f32 to vector<8x4xf32>
    %27 = arith.addf %25, %26 : vector<8x4xf32>
    %28 = math.rsqrt %27 : vector<8x4xf32>
    %cst_22 = arith.constant 0.000000e+00 : f32
    %29 = vector.broadcast %cst_22 : f32 to vector<8x4xf32>
    %30 = arith.subf %29, %19 : vector<8x4xf32>
    %31 = arith.mulf %30, %28 : vector<8x4xf32>
    %cst_23 = arith.constant 5.000000e-01 : f32
    %32 = vector.broadcast %cst_23 : f32 to vector<4x128xf32>
    %33 = arith.cmpf ogt, %12, %32 : vector<4x128xf32>
    %cst_24 = arith.constant 0.000000e+00 : f32
    %34 = vector.broadcast %cst_24 : f32 to vector<8x128xf32>
    %cst_25 = arith.constant 0.000000e+00 : f32
    %35 = vector.broadcast %cst_25 : f32 to vector<8x128xf32>
    %36 = vector.extract_strided_slice %33 {offsets = [0, 0], sizes = [1, 128], strides = [1, 1]} : vector<4x128xi1> to vector<1x128xi1>
    %37 = vector.extract_strided_slice %28 {offsets = [0, 0], sizes = [8, 1], strides = [1, 1]} : vector<8x4xf32> to vector<8x1xf32>
    %38 = vector.shape_cast %36 : vector<1x128xi1> to vector<1x128xi1>
    %39 = vector.broadcast %38 : vector<1x128xi1> to vector<8x128xi1>
    %40 = vector.shape_cast %37 : vector<8x1xf32> to vector<8x1xf32>
    %41 = vector.broadcast %40 : vector<8x1xf32> to vector<8x128xf32>
    %42 = arith.select %39, %41, %34 : vector<8x128xi1>, vector<8x128xf32>
    %43 = vector.extract_strided_slice %31 {offsets = [0, 0], sizes = [8, 1], strides = [1, 1]} : vector<8x4xf32> to vector<8x1xf32>
    %44 = vector.shape_cast %36 : vector<1x128xi1> to vector<1x128xi1>
    %45 = vector.broadcast %44 : vector<1x128xi1> to vector<8x128xi1>
    %46 = vector.shape_cast %43 : vector<8x1xf32> to vector<8x1xf32>
    %47 = vector.broadcast %46 : vector<8x1xf32> to vector<8x128xf32>
    %48 = arith.select %45, %47, %35 : vector<8x128xi1>, vector<8x128xf32>
    %49 = vector.extract_strided_slice %33 {offsets = [1, 0], sizes = [1, 128], strides = [1, 1]} : vector<4x128xi1> to vector<1x128xi1>
    %50 = vector.extract_strided_slice %28 {offsets = [0, 1], sizes = [8, 1], strides = [1, 1]} : vector<8x4xf32> to vector<8x1xf32>
    %51 = vector.shape_cast %49 : vector<1x128xi1> to vector<1x128xi1>
    %52 = vector.broadcast %51 : vector<1x128xi1> to vector<8x128xi1>
    %53 = vector.shape_cast %50 : vector<8x1xf32> to vector<8x1xf32>
    %54 = vector.broadcast %53 : vector<8x1xf32> to vector<8x128xf32>
    %55 = arith.select %52, %54, %42 : vector<8x128xi1>, vector<8x128xf32>
    %56 = vector.extract_strided_slice %31 {offsets = [0, 1], sizes = [8, 1], strides = [1, 1]} : vector<8x4xf32> to vector<8x1xf32>
    %57 = vector.shape_cast %49 : vector<1x128xi1> to vector<1x128xi1>
    %58 = vector.broadcast %57 : vector<1x128xi1> to vector<8x128xi1>
    %59 = vector.shape_cast %56 : vector<8x1xf32> to vector<8x1xf32>
    %60 = vector.broadcast %59 : vector<8x1xf32> to vector<8x128xf32>
    %61 = arith.select %58, %60, %48 : vector<8x128xi1>, vector<8x128xf32>
    %62 = vector.extract_strided_slice %33 {offsets = [2, 0], sizes = [1, 128], strides = [1, 1]} : vector<4x128xi1> to vector<1x128xi1>
    %63 = vector.extract_strided_slice %28 {offsets = [0, 2], sizes = [8, 1], strides = [1, 1]} : vector<8x4xf32> to vector<8x1xf32>
    %64 = vector.shape_cast %62 : vector<1x128xi1> to vector<1x128xi1>
    %65 = vector.broadcast %64 : vector<1x128xi1> to vector<8x128xi1>
    %66 = vector.shape_cast %63 : vector<8x1xf32> to vector<8x1xf32>
    %67 = vector.broadcast %66 : vector<8x1xf32> to vector<8x128xf32>
    %68 = arith.select %65, %67, %55 : vector<8x128xi1>, vector<8x128xf32>
    %69 = vector.extract_strided_slice %31 {offsets = [0, 2], sizes = [8, 1], strides = [1, 1]} : vector<8x4xf32> to vector<8x1xf32>
    %70 = vector.shape_cast %62 : vector<1x128xi1> to vector<1x128xi1>
    %71 = vector.broadcast %70 : vector<1x128xi1> to vector<8x128xi1>
    %72 = vector.shape_cast %69 : vector<8x1xf32> to vector<8x1xf32>
    %73 = vector.broadcast %72 : vector<8x1xf32> to vector<8x128xf32>
    %74 = arith.select %71, %73, %61 : vector<8x128xi1>, vector<8x128xf32>
    %75 = vector.extract_strided_slice %33 {offsets = [3, 0], sizes = [1, 128], strides = [1, 1]} : vector<4x128xi1> to vector<1x128xi1>
    %76 = vector.extract_strided_slice %28 {offsets = [0, 3], sizes = [8, 1], strides = [1, 1]} : vector<8x4xf32> to vector<8x1xf32>
    %77 = vector.shape_cast %75 : vector<1x128xi1> to vector<1x128xi1>
    %78 = vector.broadcast %77 : vector<1x128xi1> to vector<8x128xi1>
    %79 = vector.shape_cast %76 : vector<8x1xf32> to vector<8x1xf32>
    %80 = vector.broadcast %79 : vector<8x1xf32> to vector<8x128xf32>
    %81 = arith.select %78, %80, %68 : vector<8x128xi1>, vector<8x128xf32>
    %82 = vector.extract_strided_slice %31 {offsets = [0, 3], sizes = [8, 1], strides = [1, 1]} : vector<8x4xf32> to vector<8x1xf32>
    %83 = vector.shape_cast %75 : vector<1x128xi1> to vector<1x128xi1>
    %84 = vector.broadcast %83 : vector<1x128xi1> to vector<8x128xi1>
    %85 = vector.shape_cast %82 : vector<8x1xf32> to vector<8x1xf32>
    %86 = vector.broadcast %85 : vector<8x1xf32> to vector<8x128xf32>
    %87 = arith.select %84, %86, %74 : vector<8x128xi1>, vector<8x128xf32>
    %88 = arith.mulf %8, %81 : vector<8x128xf32>
    %89 = arith.addf %88, %87 : vector<8x128xf32>
    %90 = vector.broadcast %9 : vector<1x128xf32> to vector<8x128xf32>
    %91 = arith.mulf %89, %90 : vector<8x128xf32>
    %92 = vector.broadcast %10 : vector<1x128xf32> to vector<8x128xf32>
    %93 = arith.addf %91, %92 : vector<8x128xf32>
    %cst_26 = arith.constant 0.00999999977 : f32
    %94 = vector.broadcast %cst_26 : f32 to vector<8x128xf32>
    %95 = arith.mulf %94, %93 : vector<8x128xf32>
    %96 = arith.maximumf %93, %95 : vector<8x128xf32>
    %97 = arith.truncf %96 : vector<8x128xf32> to vector<8x128xbf16>
    %c0_27 = arith.constant 0 : index
    %c0_28 = arith.constant 0 : index
    %98 = vector.load %arg9[%c0_27, %c0_28] : memref<128x64xbf16, #tpu.memory_space<vmem>>, vector<128x64xbf16>
    %cst_29 = arith.constant dense<0.000000e+00> : vector<8x64xf32>
    %99 = tpu.matmul %97, %98, %cst_29 {dimension_numbers = #tpu.dot_dimension_numbers<[1], [0], [0], [1], [0, 0, 1, 1], [], []>} : vector<8x128xbf16>, vector<128x64xbf16>, vector<8x64xf32> -> vector<8x64xf32>
    %c0_30 = arith.constant 0 : index
    %c0_31 = arith.constant 0 : index
    %100 = vector.load %arg10[%c0_30, %c0_31] : memref<1x64xf32, #tpu.memory_space<vmem>>, vector<1x64xf32>
    %c0_32 = arith.constant 0 : index
    %c0_33 = arith.constant 0 : index
    %101 = vector.load %arg11[%c0_32, %c0_33] : memref<1x64xf32, #tpu.memory_space<vmem>>, vector<1x64xf32>
    %c0_34 = arith.constant 0 : index
    %c0_35 = arith.constant 0 : index
    %102 = vector.load %arg12[%c0_34, %c0_35] : memref<64x4xbf16, #tpu.memory_space<vmem>>, vector<64x4xbf16>
    %c0_36 = arith.constant 0 : index
    %c0_37 = arith.constant 0 : index
    %103 = vector.load %arg13[%c0_36, %c0_37] : memref<4x64xf32, #tpu.memory_space<vmem>>, vector<4x64xf32>
    %104 = arith.truncf %99 : vector<8x64xf32> to vector<8x64xbf16>
    %105 = arith.mulf %99, %99 : vector<8x64xf32>
    %106 = arith.truncf %105 : vector<8x64xf32> to vector<8x64xbf16>
    %cst_38 = arith.constant dense<0.000000e+00> : vector<8x4xf32>
    %107 = tpu.matmul %104, %102, %cst_38 {dimension_numbers = #tpu.dot_dimension_numbers<[1], [0], [0], [1], [0, 0, 1, 1], [], []>} : vector<8x64xbf16>, vector<64x4xbf16>, vector<8x4xf32> -> vector<8x4xf32>
    %cst_39 = arith.constant dense<0.000000e+00> : vector<8x4xf32>
    %108 = tpu.matmul %106, %102, %cst_39 {dimension_numbers = #tpu.dot_dimension_numbers<[1], [0], [0], [1], [0, 0, 1, 1], [], []>} : vector<8x64xbf16>, vector<64x4xbf16>, vector<8x4xf32> -> vector<8x4xf32>
    %cst_40 = arith.constant 6.250000e-02 : f32
    %109 = vector.broadcast %cst_40 : f32 to vector<8x4xf32>
    %110 = arith.mulf %107, %109 : vector<8x4xf32>
    %cst_41 = arith.constant 6.250000e-02 : f32
    %111 = vector.broadcast %cst_41 : f32 to vector<8x4xf32>
    %112 = arith.mulf %108, %111 : vector<8x4xf32>
    %113 = arith.mulf %110, %110 : vector<8x4xf32>
    %114 = arith.subf %112, %113 : vector<8x4xf32>
    %cst_42 = arith.constant 0.000000e+00 : f32
    %115 = vector.broadcast %cst_42 : f32 to vector<8x4xf32>
    %116 = arith.maximumf %114, %115 : vector<8x4xf32>
    %cst_43 = arith.constant 9.99999974E-6 : f32
    %117 = vector.broadcast %cst_43 : f32 to vector<8x4xf32>
    %118 = arith.addf %116, %117 : vector<8x4xf32>
    %119 = math.rsqrt %118 : vector<8x4xf32>
    %cst_44 = arith.constant 0.000000e+00 : f32
    %120 = vector.broadcast %cst_44 : f32 to vector<8x4xf32>
    %121 = arith.subf %120, %110 : vector<8x4xf32>
    %122 = arith.mulf %121, %119 : vector<8x4xf32>
    %cst_45 = arith.constant 5.000000e-01 : f32
    %123 = vector.broadcast %cst_45 : f32 to vector<4x64xf32>
    %124 = arith.cmpf ogt, %103, %123 : vector<4x64xf32>
    %cst_46 = arith.constant 0.000000e+00 : f32
    %125 = vector.broadcast %cst_46 : f32 to vector<8x64xf32>
    %cst_47 = arith.constant 0.000000e+00 : f32
    %126 = vector.broadcast %cst_47 : f32 to vector<8x64xf32>
    %127 = vector.extract_strided_slice %124 {offsets = [0, 0], sizes = [1, 64], strides = [1, 1]} : vector<4x64xi1> to vector<1x64xi1>
    %128 = vector.extract_strided_slice %119 {offsets = [0, 0], sizes = [8, 1], strides = [1, 1]} : vector<8x4xf32> to vector<8x1xf32>
    %129 = vector.shape_cast %127 : vector<1x64xi1> to vector<1x64xi1>
    %130 = vector.broadcast %129 : vector<1x64xi1> to vector<8x64xi1>
    %131 = vector.shape_cast %128 : vector<8x1xf32> to vector<8x1xf32>
    %132 = vector.broadcast %131 : vector<8x1xf32> to vector<8x64xf32>
    %133 = arith.select %130, %132, %125 : vector<8x64xi1>, vector<8x64xf32>
    %134 = vector.extract_strided_slice %122 {offsets = [0, 0], sizes = [8, 1], strides = [1, 1]} : vector<8x4xf32> to vector<8x1xf32>
    %135 = vector.shape_cast %127 : vector<1x64xi1> to vector<1x64xi1>
    %136 = vector.broadcast %135 : vector<1x64xi1> to vector<8x64xi1>
    %137 = vector.shape_cast %134 : vector<8x1xf32> to vector<8x1xf32>
    %138 = vector.broadcast %137 : vector<8x1xf32> to vector<8x64xf32>
    %139 = arith.select %136, %138, %126 : vector<8x64xi1>, vector<8x64xf32>
    %140 = vector.extract_strided_slice %124 {offsets = [1, 0], sizes = [1, 64], strides = [1, 1]} : vector<4x64xi1> to vector<1x64xi1>
    %141 = vector.extract_strided_slice %119 {offsets = [0, 1], sizes = [8, 1], strides = [1, 1]} : vector<8x4xf32> to vector<8x1xf32>
    %142 = vector.shape_cast %140 : vector<1x64xi1> to vector<1x64xi1>
    %143 = vector.broadcast %142 : vector<1x64xi1> to vector<8x64xi1>
    %144 = vector.shape_cast %141 : vector<8x1xf32> to vector<8x1xf32>
    %145 = vector.broadcast %144 : vector<8x1xf32> to vector<8x64xf32>
    %146 = arith.select %143, %145, %133 : vector<8x64xi1>, vector<8x64xf32>
    %147 = vector.extract_strided_slice %122 {offsets = [0, 1], sizes = [8, 1], strides = [1, 1]} : vector<8x4xf32> to vector<8x1xf32>
    %148 = vector.shape_cast %140 : vector<1x64xi1> to vector<1x64xi1>
    %149 = vector.broadcast %148 : vector<1x64xi1> to vector<8x64xi1>
    %150 = vector.shape_cast %147 : vector<8x1xf32> to vector<8x1xf32>
    %151 = vector.broadcast %150 : vector<8x1xf32> to vector<8x64xf32>
    %152 = arith.select %149, %151, %139 : vector<8x64xi1>, vector<8x64xf32>
    %153 = vector.extract_strided_slice %124 {offsets = [2, 0], sizes = [1, 64], strides = [1, 1]} : vector<4x64xi1> to vector<1x64xi1>
    %154 = vector.extract_strided_slice %119 {offsets = [0, 2], sizes = [8, 1], strides = [1, 1]} : vector<8x4xf32> to vector<8x1xf32>
    %155 = vector.shape_cast %153 : vector<1x64xi1> to vector<1x64xi1>
    %156 = vector.broadcast %155 : vector<1x64xi1> to vector<8x64xi1>
    %157 = vector.shape_cast %154 : vector<8x1xf32> to vector<8x1xf32>
    %158 = vector.broadcast %157 : vector<8x1xf32> to vector<8x64xf32>
    %159 = arith.select %156, %158, %146 : vector<8x64xi1>, vector<8x64xf32>
    %160 = vector.extract_strided_slice %122 {offsets = [0, 2], sizes = [8, 1], strides = [1, 1]} : vector<8x4xf32> to vector<8x1xf32>
    %161 = vector.shape_cast %153 : vector<1x64xi1> to vector<1x64xi1>
    %162 = vector.broadcast %161 : vector<1x64xi1> to vector<8x64xi1>
    %163 = vector.shape_cast %160 : vector<8x1xf32> to vector<8x1xf32>
    %164 = vector.broadcast %163 : vector<8x1xf32> to vector<8x64xf32>
    %165 = arith.select %162, %164, %152 : vector<8x64xi1>, vector<8x64xf32>
    %166 = vector.extract_strided_slice %124 {offsets = [3, 0], sizes = [1, 64], strides = [1, 1]} : vector<4x64xi1> to vector<1x64xi1>
    %167 = vector.extract_strided_slice %119 {offsets = [0, 3], sizes = [8, 1], strides = [1, 1]} : vector<8x4xf32> to vector<8x1xf32>
    %168 = vector.shape_cast %166 : vector<1x64xi1> to vector<1x64xi1>
    %169 = vector.broadcast %168 : vector<1x64xi1> to vector<8x64xi1>
    %170 = vector.shape_cast %167 : vector<8x1xf32> to vector<8x1xf32>
    %171 = vector.broadcast %170 : vector<8x1xf32> to vector<8x64xf32>
    %172 = arith.select %169, %171, %159 : vector<8x64xi1>, vector<8x64xf32>
    %173 = vector.extract_strided_slice %122 {offsets = [0, 3], sizes = [8, 1], strides = [1, 1]} : vector<8x4xf32> to vector<8x1xf32>
    %174 = vector.shape_cast %166 : vector<1x64xi1> to vector<1x64xi1>
    %175 = vector.broadcast %174 : vector<1x64xi1> to vector<8x64xi1>
    %176 = vector.shape_cast %173 : vector<8x1xf32> to vector<8x1xf32>
    %177 = vector.broadcast %176 : vector<8x1xf32> to vector<8x64xf32>
    %178 = arith.select %175, %177, %165 : vector<8x64xi1>, vector<8x64xf32>
    %179 = arith.mulf %99, %172 : vector<8x64xf32>
    %180 = arith.addf %179, %178 : vector<8x64xf32>
    %181 = vector.broadcast %100 : vector<1x64xf32> to vector<8x64xf32>
    %182 = arith.mulf %180, %181 : vector<8x64xf32>
    %183 = vector.broadcast %101 : vector<1x64xf32> to vector<8x64xf32>
    %184 = arith.addf %182, %183 : vector<8x64xf32>
    %cst_48 = arith.constant 0.00999999977 : f32
    %185 = vector.broadcast %cst_48 : f32 to vector<8x64xf32>
    %186 = arith.mulf %185, %184 : vector<8x64xf32>
    %187 = arith.maximumf %184, %186 : vector<8x64xf32>
    %188 = arith.truncf %187 : vector<8x64xf32> to vector<8x64xbf16>
    %c0_49 = arith.constant 0 : index
    %c0_50 = arith.constant 0 : index
    %189 = vector.load %arg14[%c0_49, %c0_50] : memref<64x32xbf16, #tpu.memory_space<vmem>>, vector<64x32xbf16>
    %cst_51 = arith.constant dense<0.000000e+00> : vector<8x32xf32>
    %190 = tpu.matmul %188, %189, %cst_51 {dimension_numbers = #tpu.dot_dimension_numbers<[1], [0], [0], [1], [0, 0, 1, 1], [], []>} : vector<8x64xbf16>, vector<64x32xbf16>, vector<8x32xf32> -> vector<8x32xf32>
    %c0_52 = arith.constant 0 : index
    %c0_53 = arith.constant 0 : index
    %191 = vector.load %arg15[%c0_52, %c0_53] : memref<1x32xf32, #tpu.memory_space<vmem>>, vector<1x32xf32>
    %c0_54 = arith.constant 0 : index
    %c0_55 = arith.constant 0 : index
    %192 = vector.load %arg16[%c0_54, %c0_55] : memref<1x32xf32, #tpu.memory_space<vmem>>, vector<1x32xf32>
    %c0_56 = arith.constant 0 : index
    %c0_57 = arith.constant 0 : index
    %193 = vector.load %arg17[%c0_56, %c0_57] : memref<32x4xbf16, #tpu.memory_space<vmem>>, vector<32x4xbf16>
    %c0_58 = arith.constant 0 : index
    %c0_59 = arith.constant 0 : index
    %194 = vector.load %arg18[%c0_58, %c0_59] : memref<4x32xf32, #tpu.memory_space<vmem>>, vector<4x32xf32>
    %195 = arith.truncf %190 : vector<8x32xf32> to vector<8x32xbf16>
    %196 = arith.mulf %190, %190 : vector<8x32xf32>
    %197 = arith.truncf %196 : vector<8x32xf32> to vector<8x32xbf16>
    %cst_60 = arith.constant dense<0.000000e+00> : vector<8x4xf32>
    %198 = tpu.matmul %195, %193, %cst_60 {dimension_numbers = #tpu.dot_dimension_numbers<[1], [0], [0], [1], [0, 0, 1, 1], [], []>} : vector<8x32xbf16>, vector<32x4xbf16>, vector<8x4xf32> -> vector<8x4xf32>
    %cst_61 = arith.constant dense<0.000000e+00> : vector<8x4xf32>
    %199 = tpu.matmul %197, %193, %cst_61 {dimension_numbers = #tpu.dot_dimension_numbers<[1], [0], [0], [1], [0, 0, 1, 1], [], []>} : vector<8x32xbf16>, vector<32x4xbf16>, vector<8x4xf32> -> vector<8x4xf32>
    %cst_62 = arith.constant 1.250000e-01 : f32
    %200 = vector.broadcast %cst_62 : f32 to vector<8x4xf32>
    %201 = arith.mulf %198, %200 : vector<8x4xf32>
    %cst_63 = arith.constant 1.250000e-01 : f32
    %202 = vector.broadcast %cst_63 : f32 to vector<8x4xf32>
    %203 = arith.mulf %199, %202 : vector<8x4xf32>
    %204 = arith.mulf %201, %201 : vector<8x4xf32>
    %205 = arith.subf %203, %204 : vector<8x4xf32>
    %cst_64 = arith.constant 0.000000e+00 : f32
    %206 = vector.broadcast %cst_64 : f32 to vector<8x4xf32>
    %207 = arith.maximumf %205, %206 : vector<8x4xf32>
    %cst_65 = arith.constant 9.99999974E-6 : f32
    %208 = vector.broadcast %cst_65 : f32 to vector<8x4xf32>
    %209 = arith.addf %207, %208 : vector<8x4xf32>
    %210 = math.rsqrt %209 : vector<8x4xf32>
    %cst_66 = arith.constant 0.000000e+00 : f32
    %211 = vector.broadcast %cst_66 : f32 to vector<8x4xf32>
    %212 = arith.subf %211, %201 : vector<8x4xf32>
    %213 = arith.mulf %212, %210 : vector<8x4xf32>
    %cst_67 = arith.constant 5.000000e-01 : f32
    %214 = vector.broadcast %cst_67 : f32 to vector<4x32xf32>
    %215 = arith.cmpf ogt, %194, %214 : vector<4x32xf32>
    %cst_68 = arith.constant 0.000000e+00 : f32
    %216 = vector.broadcast %cst_68 : f32 to vector<8x32xf32>
    %cst_69 = arith.constant 0.000000e+00 : f32
    %217 = vector.broadcast %cst_69 : f32 to vector<8x32xf32>
    %218 = vector.extract_strided_slice %215 {offsets = [0, 0], sizes = [1, 32], strides = [1, 1]} : vector<4x32xi1> to vector<1x32xi1>
    %219 = vector.extract_strided_slice %210 {offsets = [0, 0], sizes = [8, 1], strides = [1, 1]} : vector<8x4xf32> to vector<8x1xf32>
    %220 = vector.shape_cast %218 : vector<1x32xi1> to vector<1x32xi1>
    %221 = vector.broadcast %220 : vector<1x32xi1> to vector<8x32xi1>
    %222 = vector.shape_cast %219 : vector<8x1xf32> to vector<8x1xf32>
    %223 = vector.broadcast %222 : vector<8x1xf32> to vector<8x32xf32>
    %224 = arith.select %221, %223, %216 : vector<8x32xi1>, vector<8x32xf32>
    %225 = vector.extract_strided_slice %213 {offsets = [0, 0], sizes = [8, 1], strides = [1, 1]} : vector<8x4xf32> to vector<8x1xf32>
    %226 = vector.shape_cast %218 : vector<1x32xi1> to vector<1x32xi1>
    %227 = vector.broadcast %226 : vector<1x32xi1> to vector<8x32xi1>
    %228 = vector.shape_cast %225 : vector<8x1xf32> to vector<8x1xf32>
    %229 = vector.broadcast %228 : vector<8x1xf32> to vector<8x32xf32>
    %230 = arith.select %227, %229, %217 : vector<8x32xi1>, vector<8x32xf32>
    %231 = vector.extract_strided_slice %215 {offsets = [1, 0], sizes = [1, 32], strides = [1, 1]} : vector<4x32xi1> to vector<1x32xi1>
    %232 = vector.extract_strided_slice %210 {offsets = [0, 1], sizes = [8, 1], strides = [1, 1]} : vector<8x4xf32> to vector<8x1xf32>
    %233 = vector.shape_cast %231 : vector<1x32xi1> to vector<1x32xi1>
    %234 = vector.broadcast %233 : vector<1x32xi1> to vector<8x32xi1>
    %235 = vector.shape_cast %232 : vector<8x1xf32> to vector<8x1xf32>
    %236 = vector.broadcast %235 : vector<8x1xf32> to vector<8x32xf32>
    %237 = arith.select %234, %236, %224 : vector<8x32xi1>, vector<8x32xf32>
    %238 = vector.extract_strided_slice %213 {offsets = [0, 1], sizes = [8, 1], strides = [1, 1]} : vector<8x4xf32> to vector<8x1xf32>
    %239 = vector.shape_cast %231 : vector<1x32xi1> to vector<1x32xi1>
    %240 = vector.broadcast %239 : vector<1x32xi1> to vector<8x32xi1>
    %241 = vector.shape_cast %238 : vector<8x1xf32> to vector<8x1xf32>
    %242 = vector.broadcast %241 : vector<8x1xf32> to vector<8x32xf32>
    %243 = arith.select %240, %242, %230 : vector<8x32xi1>, vector<8x32xf32>
    %244 = vector.extract_strided_slice %215 {offsets = [2, 0], sizes = [1, 32], strides = [1, 1]} : vector<4x32xi1> to vector<1x32xi1>
    %245 = vector.extract_strided_slice %210 {offsets = [0, 2], sizes = [8, 1], strides = [1, 1]} : vector<8x4xf32> to vector<8x1xf32>
    %246 = vector.shape_cast %244 : vector<1x32xi1> to vector<1x32xi1>
    %247 = vector.broadcast %246 : vector<1x32xi1> to vector<8x32xi1>
    %248 = vector.shape_cast %245 : vector<8x1xf32> to vector<8x1xf32>
    %249 = vector.broadcast %248 : vector<8x1xf32> to vector<8x32xf32>
    %250 = arith.select %247, %249, %237 : vector<8x32xi1>, vector<8x32xf32>
    %251 = vector.extract_strided_slice %213 {offsets = [0, 2], sizes = [8, 1], strides = [1, 1]} : vector<8x4xf32> to vector<8x1xf32>
    %252 = vector.shape_cast %244 : vector<1x32xi1> to vector<1x32xi1>
    %253 = vector.broadcast %252 : vector<1x32xi1> to vector<8x32xi1>
    %254 = vector.shape_cast %251 : vector<8x1xf32> to vector<8x1xf32>
    %255 = vector.broadcast %254 : vector<8x1xf32> to vector<8x32xf32>
    %256 = arith.select %253, %255, %243 : vector<8x32xi1>, vector<8x32xf32>
    %257 = vector.extract_strided_slice %215 {offsets = [3, 0], sizes = [1, 32], strides = [1, 1]} : vector<4x32xi1> to vector<1x32xi1>
    %258 = vector.extract_strided_slice %210 {offsets = [0, 3], sizes = [8, 1], strides = [1, 1]} : vector<8x4xf32> to vector<8x1xf32>
    %259 = vector.shape_cast %257 : vector<1x32xi1> to vector<1x32xi1>
    %260 = vector.broadcast %259 : vector<1x32xi1> to vector<8x32xi1>
    %261 = vector.shape_cast %258 : vector<8x1xf32> to vector<8x1xf32>
    %262 = vector.broadcast %261 : vector<8x1xf32> to vector<8x32xf32>
    %263 = arith.select %260, %262, %250 : vector<8x32xi1>, vector<8x32xf32>
    %264 = vector.extract_strided_slice %213 {offsets = [0, 3], sizes = [8, 1], strides = [1, 1]} : vector<8x4xf32> to vector<8x1xf32>
    %265 = vector.shape_cast %257 : vector<1x32xi1> to vector<1x32xi1>
    %266 = vector.broadcast %265 : vector<1x32xi1> to vector<8x32xi1>
    %267 = vector.shape_cast %264 : vector<8x1xf32> to vector<8x1xf32>
    %268 = vector.broadcast %267 : vector<8x1xf32> to vector<8x32xf32>
    %269 = arith.select %266, %268, %256 : vector<8x32xi1>, vector<8x32xf32>
    %270 = arith.mulf %190, %263 : vector<8x32xf32>
    %271 = arith.addf %270, %269 : vector<8x32xf32>
    %272 = vector.broadcast %191 : vector<1x32xf32> to vector<8x32xf32>
    %273 = arith.mulf %271, %272 : vector<8x32xf32>
    %274 = vector.broadcast %192 : vector<1x32xf32> to vector<8x32xf32>
    %275 = arith.addf %273, %274 : vector<8x32xf32>
    %cst_70 = arith.constant 0.00999999977 : f32
    %276 = vector.broadcast %cst_70 : f32 to vector<8x32xf32>
    %277 = arith.mulf %276, %275 : vector<8x32xf32>
    %278 = arith.maximumf %275, %277 : vector<8x32xf32>
    %279 = arith.truncf %278 : vector<8x32xf32> to vector<8x32xbf16>
    %c0_71 = arith.constant 0 : index
    %c0_72 = arith.constant 0 : index
    %280 = vector.load %arg19[%c0_71, %c0_72] : memref<32x8xbf16, #tpu.memory_space<vmem>>, vector<32x8xbf16>
    %cst_73 = arith.constant dense<0.000000e+00> : vector<8x8xf32>
    %281 = tpu.matmul %279, %280, %cst_73 {dimension_numbers = #tpu.dot_dimension_numbers<[1], [0], [0], [1], [0, 0, 1, 1], [], []>} : vector<8x32xbf16>, vector<32x8xbf16>, vector<8x8xf32> -> vector<8x8xf32>
    %c0_74 = arith.constant 0 : index
    %c0_75 = arith.constant 0 : index
    %282 = vector.load %arg20[%c0_74, %c0_75] : memref<1x8xf32, #tpu.memory_space<vmem>>, vector<1x8xf32>
    %283 = vector.broadcast %282 : vector<1x8xf32> to vector<8x8xf32>
    %284 = arith.addf %281, %283 : vector<8x8xf32>
    %c0_76 = arith.constant 0 : index
    %c0_77 = arith.constant 0 : index
    %285 = vector.load %arg21[%c0_76, %c0_77] : memref<8x8xf32, #tpu.memory_space<vmem>>, vector<8x8xf32>
    tpu.vector_store %arg21[%c0_76, %c0_77], %284 {strides = array<i32>} : memref<8x8xf32, #tpu.memory_space<vmem>>, vector<8x8xf32>,
    return
  }
  func.func @transform_0(%arg0: i32) -> (i32, i32) {
    %c0_i32 = arith.constant 0 : i32
    %c0_i32_0 = arith.constant 0 : i32
    return %arg0, %c0_i32 : i32, i32
  }
  func.func @transform_1(%arg0: i32) -> (i32, i32) {
    %c0_i32 = arith.constant 0 : i32
    %c0_i32_0 = arith.constant 0 : i32
    return %arg0, %c0_i32 : i32, i32
  }
  func.func @transform_2(%arg0: i32) -> (i32, i32) {
    %c0_i32 = arith.constant 0 : i32
    %c0_i32_0 = arith.constant 0 : i32
    %c0_i32_1 = arith.constant 0 : i32
    return %c0_i32, %c0_i32_0 : i32, i32
  }
  func.func @transform_3(%arg0: i32) -> (i32, i32) {
    %c0_i32 = arith.constant 0 : i32
    %c0_i32_0 = arith.constant 0 : i32
    %c0_i32_1 = arith.constant 0 : i32
    return %c0_i32, %c0_i32_0 : i32, i32
  }
  func.func @transform_4(%arg0: i32) -> (i32, i32) {
    %c0_i32 = arith.constant 0 : i32
    %c0_i32_0 = arith.constant 0 : i32
    %c0_i32_1 = arith.constant 0 : i32
    return %c0_i32, %c0_i32_0 : i32, i32
  }
  func.func @transform_5(%arg0: i32) -> (i32, i32) {
    %c0_i32 = arith.constant 0 : i32
    %c0_i32_0 = arith.constant 0 : i32
    %c0_i32_1 = arith.constant 0 : i32
    return %c0_i32, %c0_i32_0 : i32, i32
  }
  func.func @transform_6(%arg0: i32) -> (i32, i32) {
    %c0_i32 = arith.constant 0 : i32
    %c0_i32_0 = arith.constant 0 : i32
    %c0_i32_1 = arith.constant 0 : i32
    return %c0_i32, %c0_i32_0 : i32, i32
  }
  func.func @transform_7(%arg0: i32) -> (i32, i32) {
    %c0_i32 = arith.constant 0 : i32
    %c0_i32_0 = arith.constant 0 : i32
    %c0_i32_1 = arith.constant 0 : i32
    return %c0_i32, %c0_i32_0 : i32, i32
  }
  func.func @transform_8(%arg0: i32) -> (i32, i32) {
    %c0_i32 = arith.constant 0 : i32
    %c0_i32_0 = arith.constant 0 : i32
    %c0_i32_1 = arith.constant 0 : i32
    return %c0_i32, %c0_i32_0 : i32, i32
  }
  func.func @transform_9(%arg0: i32) -> (i32, i32) {
    %c0_i32 = arith.constant 0 : i32
    %c0_i32_0 = arith.constant 0 : i32
    %c0_i32_1 = arith.constant 0 : i32
    return %c0_i32, %c0_i32_0 : i32, i32
  }
  func.func @transform_10(%arg0: i32) -> (i32, i32) {
    %c0_i32 = arith.constant 0 : i32
    %c0_i32_0 = arith.constant 0 : i32
    %c0_i32_1 = arith.constant 0 : i32
    return %c0_i32, %c0_i32_0 : i32, i32
  }
  func.func @transform_11(%arg0: i32) -> (i32, i32) {
    %c0_i32 = arith.constant 0 : i32
    %c0_i32_0 = arith.constant 0 : i32
    %c0_i32_1 = arith.constant 0 : i32
    return %c0_i32, %c0_i32_0 : i32, i32
  }
  func.func @transform_12(%arg0: i32) -> (i32, i32) {
    %c0_i32 = arith.constant 0 : i32
    %c0_i32_0 = arith.constant 0 : i32
    %c0_i32_1 = arith.constant 0 : i32
    return %c0_i32, %c0_i32_0 : i32, i32
  }
  func.func @transform_13(%arg0: i32) -> (i32, i32) {
    %c0_i32 = arith.constant 0 : i32
    %c0_i32_0 = arith.constant 0 : i32
    %c0_i32_1 = arith.constant 0 : i32
    return %c0_i32, %c0_i32_0 : i32, i32
  }
  func.func @transform_14(%arg0: i32) -> (i32, i32) {
    %c0_i32 = arith.constant 0 : i32
    %c0_i32_0 = arith.constant 0 : i32
    %c0_i32_1 = arith.constant 0 : i32
    return %c0_i32, %c0_i32_0 : i32, i32
  }
  func.func @transform_15(%arg0: i32) -> (i32, i32) {
    %c0_i32 = arith.constant 0 : i32
    %c0_i32_0 = arith.constant 0 : i32
    %c0_i32_1 = arith.constant 0 : i32
    return %c0_i32, %c0_i32_0 : i32, i32
  }
  func.func @transform_16(%arg0: i32) -> (i32, i32) {
    %c0_i32 = arith.constant 0 : i32
    %c0_i32_0 = arith.constant 0 : i32
    %c0_i32_1 = arith.constant 0 : i32
    return %c0_i32, %c0_i32_0 : i32, i32
  }
  func.func @transform_17(%arg0: i32) -> (i32, i32) {
    %c0_i32 = arith.constant 0 : i32
    %c0_i32_0 = arith.constant 0 : i32
    %c0_i32_1 = arith.constant 0 : i32
    return %c0_i32, %c0_i32_0 : i32, i32
  }
  func.func @transform_18(%arg0: i32) -> (i32, i32) {
    %c0_i32 = arith.constant 0 : i32
    %c0_i32_0 = arith.constant 0 : i32
    %c0_i32_1 = arith.constant 0 : i32
    return %c0_i32, %c0_i32_0 : i32, i32
  }
  func.func @transform_19(%arg0: i32) -> (i32, i32) {
    %c0_i32 = arith.constant 0 : i32
    %c0_i32_0 = arith.constant 0 : i32
    %c0_i32_1 = arith.constant 0 : i32
    return %c0_i32, %c0_i32_0 : i32, i32
  }
  func.func @transform_20(%arg0: i32) -> (i32, i32) {
    %c0_i32 = arith.constant 0 : i32
    %c0_i32_0 = arith.constant 0 : i32
    return %arg0, %c0_i32 : i32, i32
  }
}

</mosaic_0001>

<bundles_post_ra>
// kernel: offnet_forward.1
= control target key start
LH: loop header
LB: loop body
LE: loop exit
PB: predicated region body
PF: predicated region fallthrough
CT: control target
= control target key end

     0   :  { %v2479_v0 = vmov 0.0   ;;  %vm2480_vm0 = vmmov 0   ;;  %vm110_vm1 = vcmask 523264   ;;  %v2481_v33 = vmov 1   ;;  %s3577_s3 = inlined_call_operand.vmem [shape: bf16[64,128], index: 3, kind: input, shape index: {}]   ;;  %s3578_s2 = inlined_call_operand.vmem [shape: bf16[64,128], index: 2, kind: input, shape index: {}]   ;;  %s3579_s1 = inlined_call_operand.vmem [shape: f32[8,64], index: 1, kind: input, shape index: {}]   ;;  %s3580_s6 = inlined_call_operand.vmem [shape: bf16[128,4], index: 6, kind: input, shape index: {}]   ;;  %s3581_s0 = inlined_call_operand.vmem [shape: f32[8,64], index: 0, kind: input, shape index: {}]   ;;  %s3582_s8 = inlined_call_operand.vmem [shape: bf16[128,64], index: 8, kind: input, shape index: {}]   ;;  %s3583_s11 = inlined_call_operand.vmem [shape: bf16[64,4], index: 11, kind: input, shape index: {}]   ;;  %s3584_s7 = inlined_call_operand.vmem [shape: f32[4,128], index: 7, kind: input, shape index: {}]   ;;  %s3585_s4 = inlined_call_operand.vmem [shape: f32[1,128], index: 4, kind: input, shape index: {}]   ;;  %s3586_s5 = inlined_call_operand.vmem [shape: f32[1,128], index: 5, kind: input, shape index: {}]   ;;  %s3587_s13 = inlined_call_operand.vmem [shape: bf16[64,32], index: 13, kind: input, shape index: {}]   ;;  %s3588_s16 = inlined_call_operand.vmem [shape: bf16[32,4], index: 16, kind: input, shape index: {}]   ;;  %s3589_s12 = inlined_call_operand.vmem [shape: f32[4,64], index: 12, kind: input, shape index: {}]   ;;  %s3590_s9 = inlined_call_operand.vmem [shape: f32[1,64], index: 9, kind: input, shape index: {}]   ;;  %s3591_s10 = inlined_call_operand.vmem [shape: f32[1,64], index: 10, kind: input, shape index: {}]   ;;  %s3592_s18 = inlined_call_operand.vmem [shape: bf16[32,8], index: 18, kind: input, shape index: {}]   ;;  %s3593_s17 = inlined_call_operand.vmem [shape: f32[4,32], index: 17, kind: input, shape index: {}]   ;;  %s3594_s14 = inlined_call_operand.vmem [shape: f32[1,32], index: 14, kind: input, shape index: {}]   ;;  %s3595_s15 = inlined_call_operand.vmem [shape: f32[1,32], index: 15, kind: input, shape index: {}]   ;;  %s3596_s19 = inlined_call_operand.vmem [shape: f32[1,8], index: 19, kind: input, shape index: {}]   ;;  %s3597_s20 = inlined_call_operand.vmem [shape: f32[8,8], index: 20, kind: output, shape index: {}]  }
   0x1   :  { %3601 = sst [smem:[#allocation2_spill]] %s3577_s3  ;;  %2267 = vmatprep.subr.bf16.mxu0 %v2479_v0  ;;  %2279 = vmatprep.subr.bf16.mxu1 %v2479_v0  ;;  %v2482_v34 = vmov 0   ;;  %v2483_v52 = vmov 2   ;;  %v2484_v53 = vmov 3   ;;  %v2453_v54 = vld [vmem:[%s3582_s8 + $0x38] sm:$0xff]   ;;  %v2454_v55 = vld [vmem:[%s3582_s8 + $0x30] sm:$0xff]  }
   0x2   :  { %3602 = sst [smem:[#allocation3_spill]] %s3578_s2  ;;  %2275 = vmatprep.mubr.msk.bf16.mxu0 %vm2480_vm0, %v2479_v0  ;;  %2287 = vmatprep.mubr.msk.bf16.mxu1 %vm2480_vm0, %v2479_v0  ;;  %v2455_v56 = vld [vmem:[%s3582_s8 + $0x28] sm:$0xff]   ;;  %v2456_v57 = vld [vmem:[%s3582_s8 + $0x20] sm:$0xff]   ;;  %v2457_v58 = vld [vmem:[%s3582_s8 + $0x18] sm:$0xff]   ;;  %vm747_vm3 = vcmask 1041409   ;;  %vm750_vm4 = vcmask 1042434  }
   0x3   :  { %3603 = sst [smem:[#allocation4_spill]] %s3579_s1  ;;  %2418 = vset.pattern.permute.xlu1 %v2481_v33  ;;  %2417 = vset.pattern.permute.xlu0 %v2482_v34  ;;  %v2458_v59 = vld [vmem:[%s3582_s8 + $0x10] sm:$0xff]   ;;  %v2459_v60 = vld [vmem:[%s3582_s8 + $0x8] sm:$0xff]   ;;  %v2460_v61 = vld [vmem:[%s3582_s8] sm:$0xff]   ;;  %vm752_vm5 = vcmask 1043459   ;;  %vm755_vm6 = vcmask 1044484  }
   0x4   :  { %3604 = sst [smem:[#allocation5_spill]] %s3580_s6  ;;  %v2732_v62 = vld [vmem:[%s3583_s11 + $0x18] sm:$0xff]   ;;  %v2739_v63 = vld [vmem:[%s3583_s11 + $0x10] sm:$0xff]   ;;  %vm758_vm7 = vcmask 1045509   ;;  %vm761_vm8 = vcmask 1046534   ;;  %vm764_vm9 = vcmask 1047559  }
   0x5   :  { %3605 = sst [smem:[#allocation6_spill]] %s3581_s0  ;;  %vm1565_vm11 = vcmask 261120   ;;  %vm2149_vm13 = vcmask 64512  }
   0x6   :  { %s3606_s23 = sld [smem:[#allocation2_spill]] }
   0x7   :  { %s3607_s25 = sld [smem:[#allocation3_spill]] }
   0x8   :  { %s3608_s26 = sld [smem:[#allocation4_spill]] }
   0x9   :  { %s3609_s0 = sld [smem:[#allocation6_spill]] }
   0xa   :  { %s3610_s29 = sld [smem:[#allocation5_spill]] }
   0xc   :  { %v2437_v1 = vld [vmem:[%s3606_s23 + $0x18] sm:$0xff]   ;;  %v2439_v3 = vld [vmem:[%s3606_s23 + $0x10] sm:$0xff]   ;;  %v2441_v5 = vld [vmem:[%s3606_s23 + $0x8] sm:$0xff]  }
   0xd   :  { %v2438_v2 = vld [vmem:[%s3607_s25 + $0x18] sm:$0xff]   ;;  %2268 = vmatpush3.bf16.msra.mxu0 %v2437_v1  ;;  %v2440_v4 = vld [vmem:[%s3607_s25 + $0x10] sm:$0xff]   ;;  %v2442_v6 = vld [vmem:[%s3607_s25 + $0x8] sm:$0xff]  }
   0xe   :  { %2280 = vmatpush3.bf16.msra.mxu1 %v2438_v2  ;;  %2269 = vmatprep.subr.bf16.mxu0 %v2479_v0  ;;  %v2443_v7 = vld [vmem:[%s3606_s23] sm:$0xff]   ;;  %v2746_v1 = vld [vmem:[%s3583_s11 + $0x8] sm:$0xff]  }
   0xf   :  { %2281 = vmatprep.subr.bf16.mxu1 %v2479_v0  ;;  %v2444_v8 = vld [vmem:[%s3607_s25] sm:$0xff]  }
  0x10   :  { %v68_v9 = vld [vmem:[%s3608_s26] sm:$0xff]  ;;  %v2445_v13 = vld [vmem:[%s3610_s29 + $0x38] sm:$0xff]   ;;  %v2446_v14 = vld [vmem:[%s3610_s29 + $0x30] sm:$0xff]  }
  0x11   :  { %2270 = vmatpush3.bf16.msra.mxu0 %v2439_v3  ;;  %v66_v10 = vld [vmem:[%s3609_s0] sm:$0xff]  ;;  %v69_v11 = vpack.c.bf16 %v68_v9, %v68_v9  ;;  %v2447_v15 = vld [vmem:[%s3610_s29 + $0x28] sm:$0xff]   ;;  %v2449_v17 = vld [vmem:[%s3610_s29 + $0x18] sm:$0xff]  }
  0x12   :  { %2282 = vmatpush3.bf16.msra.mxu1 %v2440_v4  ;;  %2271 = vmatprep.subr.bf16.mxu0 %v2479_v0  ;;  %v67_v12 = vpack.c.bf16 %v66_v10, %v66_v10  ;;  %v2448_v16 = vld [vmem:[%s3610_s29 + $0x20] sm:$0xff]   ;;  %v2450_v18 = vld [vmem:[%s3610_s29 + $0x10] sm:$0xff]   ;;  %v2451_v19 = vld [vmem:[%s3610_s29 + $0x8] sm:$0xff]  }
  0x13   :  { %2283 = vmatprep.subr.bf16.mxu1 %v2479_v0  ;;  %v2452_v20 = vld [vmem:[%s3610_s29] sm:$0xff]  }
  0x14   :  { %v2753_v2 = vld [vmem:[%s3583_s11] sm:$0xff]  }
  0x15   :  { %2272 = vmatpush3.bf16.msra.mxu0 %v2441_v5  ;;  %v2761_v3 = vld [vmem:[%s3584_s7] sm:$0xf] }
  0x16   :  { %2284 = vmatpush3.bf16.msra.mxu1 %v2442_v6  ;;  %2273 = vmatprep.subr.bf16.mxu0 %v2479_v0  ;;  %vm380_vm2 = vcmp.gt.f32.partialorder %v2761_v3, 0.5  ;;  %v2173_v3 = vld [vmem:[%s3585_s4] ss:$0 sm:$0xff] }
  0x17   :  { %2285 = vmatprep.subr.bf16.mxu1 %v2479_v0 }
  0x19   :  { %2274 = vmatpush3.bf16.msra.mxu0 %v2443_v7 }
  0x1a   :  { %2286 = vmatpush3.bf16.msra.mxu1 %v2444_v8  ;;  %2291 = vmatprep.subr.bf16.mxu0 %v2479_v0 }
  0x1b   :  { %2311 = vmatprep.subr.bf16.mxu1 %v2479_v0 }
  0x1c   :  { %2276 = vmatmul.mubr.msk.bf16.vlgmr.msra.gmra.mxu0 %vm110_vm1, %v69_v11 }
  0x1d   :  { %2288 = vmatmul.mubr.msk.bf16.vlgmr.msra.gmra.mxu1 %vm110_vm1, %v67_v12  ;;  %2292 = vmatpush3.bf16.msra.mxu0 %v2445_v13 }
  0x1e   :  { %2312 = vmatpush3.bf16.msra.mxu1 %v2445_v13  ;;  %2293 = vmatprep.subr.bf16.mxu0 %v2479_v0 }
  0x1f   :  { %2313 = vmatprep.subr.bf16.mxu1 %v2479_v0  ;;  %2307 = vmatprep.mubr.msk.bf16.mxu0 %vm2480_vm0, %v2479_v0 }
  0x20   :  { %2327 = vmatprep.mubr.msk.bf16.mxu1 %vm2480_vm0, %v2479_v0 }
  0x21   :  { %2294 = vmatpush3.bf16.msra.mxu0 %v2446_v14 }
  0x22   :  { %2314 = vmatpush3.bf16.msra.mxu1 %v2446_v14  ;;  %2295 = vmatprep.subr.bf16.mxu0 %v2479_v0 }
  0x23   :  { %2315 = vmatprep.subr.bf16.mxu1 %v2479_v0 }
  0x25   :  { %2296 = vmatpush3.bf16.msra.mxu0 %v2447_v15 }
  0x26   :  { %2316 = vmatpush3.bf16.msra.mxu1 %v2447_v15  ;;  %2297 = vmatprep.subr.bf16.mxu0 %v2479_v0 }
  0x27   :  { %2317 = vmatprep.subr.bf16.mxu1 %v2479_v0 }
  0x29   :  { %2298 = vmatpush3.bf16.msra.mxu0 %v2448_v16 }
  0x2a   :  { %2318 = vmatpush3.bf16.msra.mxu1 %v2448_v16  ;;  %2299 = vmatprep.subr.bf16.mxu0 %v2479_v0 }
  0x2b   :  { %2319 = vmatprep.subr.bf16.mxu1 %v2479_v0 }
  0x2d   :  { %2300 = vmatpush3.bf16.msra.mxu0 %v2449_v17 }
  0x2e   :  { %2320 = vmatpush3.bf16.msra.mxu1 %v2449_v17  ;;  %2301 = vmatprep.subr.bf16.mxu0 %v2479_v0 }
  0x2f   :  { %2321 = vmatprep.subr.bf16.mxu1 %v2479_v0 }
  0x31   :  { %2302 = vmatpush3.bf16.msra.mxu0 %v2450_v18 }
  0x32   :  { %2322 = vmatpush3.bf16.msra.mxu1 %v2450_v18  ;;  %2303 = vmatprep.subr.bf16.mxu0 %v2479_v0 }
  0x33   :  { %2323 = vmatprep.subr.bf16.mxu1 %v2479_v0 }
  0x35   :  { %2304 = vmatpush3.bf16.msra.mxu0 %v2451_v19 }
  0x36   :  { %2324 = vmatpush3.bf16.msra.mxu1 %v2451_v19  ;;  %2305 = vmatprep.subr.bf16.mxu0 %v2479_v0 }
  0x37   :  { %2325 = vmatprep.subr.bf16.mxu1 %v2479_v0 }
  0x39   :  { %2306 = vmatpush3.bf16.msra.mxu0 %v2452_v20 }
  0x3a   :  { %2326 = vmatpush3.bf16.msra.mxu1 %v2452_v20  ;;  %2331 = vmatprep.subr.bf16.mxu0 %v2479_v0 }
  0x3b   :  { %2351 = vmatprep.subr.bf16.mxu1 %v2479_v0 }
  0xdc   :  { %v148_v21 = vpop.f32.mrf.mxu0 }
  0xdd   :  { %v215_v22 = vpop.f32.mrf.mxu1 }
  0xde   :  { %v2680_v23 = vadd.f32 %v215_v22, %v148_v21  ;;  %v2277_v24 = vpop.f32.mrf.mxu0 }
  0xdf   :  { %v2289_v25 = vpop.f32.mrf.mxu1 }
  0xe0   :  { %v240_v26 = vpack.c.bf16 %v2680_v23, %v2680_v23  ;;  %v241_v27 = vmul.f32 %v2680_v23, %v2680_v23  ;;  %v151_v28 = vpop.f32.mrf.mxu0 }
  0xe1   :  { %v218_v29 = vpop.f32.mrf.mxu1 }
  0xe2   :  { %v242_v30 = vpack.c.bf16 %v241_v27, %v241_v27  ;;  %2308 = vmatmul.mubr.bf16.vlgmr.msra.gmra.mxu0 %v240_v26  ;;  %v2278_v31 = vpop.f32.mrf.mxu0 }
  0xe3   :  { %v2290_v32 = vpop.f32.mrf.mxu1  ;;  %2347 = vmatprep.mubr.msk.bf16.mxu0 %vm2480_vm0, %v2479_v0  ;;  %2332 = vmatpush3.bf16.msra.mxu0 %v2453_v54 }
  0xe4   :  { %2328 = vmatmul.mubr.bf16.vlgmr.msra.gmra.mxu1 %v242_v30  ;;  %2333 = vmatprep.subr.bf16.mxu0 %v2479_v0 }
  0xe5   :  { %2359 = vmatprep.mubr.msk.bf16.mxu1 %vm2480_vm0, %v2479_v0  ;;  %2352 = vmatpush3.bf16.msra.mxu1 %v2732_v62 }
  0xe6   :  { %2353 = vmatprep.subr.bf16.mxu1 %v2479_v0 }
  0xe7   :  { %2334 = vmatpush3.bf16.msra.mxu0 %v2454_v55 }
  0xe8   :  { %2335 = vmatprep.subr.bf16.mxu0 %v2479_v0 }
  0xe9   :  { %2354 = vmatpush3.bf16.msra.mxu1 %v2739_v63 }
  0xea   :  { %2355 = vmatprep.subr.bf16.mxu1 %v2479_v0 }
  0xeb   :  { %2336 = vmatpush3.bf16.msra.mxu0 %v2455_v56 }
  0xec   :  { %2337 = vmatprep.subr.bf16.mxu0 %v2479_v0 }
  0xed   :  { %2356 = vmatpush3.bf16.msra.mxu1 %v2746_v1 }
  0xee   :  { %2357 = vmatprep.subr.bf16.mxu1 %v2479_v0 }
  0xef   :  { %2338 = vmatpush3.bf16.msra.mxu0 %v2456_v57 }
  0xf0   :  { %2339 = vmatprep.subr.bf16.mxu0 %v2479_v0 }
  0xf1   :  { %2358 = vmatpush3.bf16.msra.mxu1 %v2753_v2 }
  0xf2   :  { %2363 = vmatprep.subr.bf16.mxu1 %v2479_v0 }
  0xf3   :  { %2340 = vmatpush3.bf16.msra.mxu0 %v2457_v58 }
  0xf4   :  { %2341 = vmatprep.subr.bf16.mxu0 %v2479_v0 }
  0xf7   :  { %2342 = vmatpush3.bf16.msra.mxu0 %v2458_v59 }
  0xf8   :  { %2343 = vmatprep.subr.bf16.mxu0 %v2479_v0 }
  0xfb   :  { %2344 = vmatpush3.bf16.msra.mxu0 %v2459_v60 }
  0xfc   :  { %2345 = vmatprep.subr.bf16.mxu0 %v2479_v0 }
  0xff   :  { %2346 = vmatpush3.bf16.msra.mxu0 %v2460_v61 }
 0x100   :  { %2375 = vmatprep.subr.bf16.mxu0 %v2479_v0 }
 0x1a2   :  { %v325_v35 = vpop.f32.mrf.mxu0 }
 0x1a3   :  { %v371_v36 = vmul.f32 0.03125, %v325_v35 }
 0x1a4   :  { %v2309_v37 = vpop.f32.mrf.mxu0  ;;  %v365_v38 = vpop.f32.mrf.mxu1 }
 0x1a5   :  { %v373_v39 = vmul.f32 %v371_v36, %v371_v36  ;;  %v372_v40 = vmul.f32 0.03125, %v365_v38  ;;  %v378_v50 = vsub.f32 0.0, %v371_v36 }
 0x1a6   :  { %v328_v41 = vpop.f32.mrf.mxu0  ;;  %v2329_v42 = vpop.f32.mrf.mxu1 }
 0x1a7   :  { %v374_v43 = vsub.f32 %v372_v40, %v373_v39 }
 0x1a8   :  { %v2310_v44 = vpop.f32.mrf.mxu0  ;;  %v368_v45 = vpop.f32.mrf.mxu1 }
 0x1a9   :  { %v375_v46 = vmax.f32 %v374_v43, 0.0 }
 0x1aa   :  { %v2330_v47 = vpop.f32.mrf.mxu1 }
 0x1ab   :  { %v376_v48 = vadd.f32 1e-05, %v375_v46 }
 0x1ad   :  { %2473 = vrsqrt.f32 %v376_v48 }
 0x1ba   :  { %v2474_v49 = vpop.eup %2473 }
 0x1bb   :  { %438 = vperm.xlu1 %2418, %v2474_v49   ;;  %385 = vperm.xlu0 %2417, %v2474_v49   ;;  %v379_v51 = vmul.f32 %v2474_v49, %v378_v50 }
 0x1bf   :  { %488 = vperm.xlu1 %2418, %v379_v51   ;;  %412 = vperm.xlu0 %2417, %v379_v51  }
 0x1c3   :  { %2420 = vset.pattern.permute.xlu1 %v2483_v52  ;;  %2419 = vset.pattern.permute.xlu0 %v2483_v52 }
 0x1c4   :  { %588 = vperm.xlu1 %2420, %v379_v51   ;;  %538 = vperm.xlu0 %2419, %v2474_v49  }
 0x1c8   :  { %2421 = vset.pattern.permute.xlu1 %v2484_v53  ;;  %2422 = vset.pattern.permute.xlu0 %v2484_v53 }
 0x1c9   :  { %638 = vperm.xlu1 %2421, %v2474_v49   ;;  %688 = vperm.xlu0 %2422, %v379_v51  }
 0x1cd   :  { %2423 = vset.pattern.permute.xlu1 %v2482_v34  ;;  %2424 = vset.pattern.permute.xlu0 %v2481_v33 }
 0x236   :  { %v2763_v4 = vpop.permute.xlu1 %438  ;;  %v386_v5 = vpop.permute.xlu0 %385 }
 0x237   :  { %v440_v6 = vrot.slane %v2763_v4, 7  ;;  %v441_v7 = vrot.slane %v2763_v4, 1  ;;  %v442_v8 = vrot.slane %v2763_v4, 2  ;;  %v443_v9 = vrot.slane %v2763_v4, 3 }
 0x238   :  { %v444_v10 = vrot.slane %v2763_v4, 4  ;;  %v445_v11 = vrot.slane %v2763_v4, 5  ;;  %v446_v12 = vrot.slane %v2763_v4, 6  ;;  %v387_v13 = vrot.slane %v386_v5, 1 }
 0x239   :  { %v388_v14 = vrot.slane %v386_v5, 2  ;;  %v389_v15 = vrot.slane %v386_v5, 3  ;;  %v390_v16 = vrot.slane %v386_v5, 4  ;;  %v391_v17 = vrot.slane %v386_v5, 5 }
 0x23a   :  { %v392_v18 = vrot.slane %v386_v5, 6  ;;  %v393_v19 = vrot.slane %v386_v5, 7  ;;  %v402_v20 = vsel %vm380_vm2, %v386_v5, 0.0  ;;  %v403_v21 = vsel %vm380_vm2, %v387_v13, 0.0  ;;  %v489_v45 = vpop.permute.xlu1 %488  ;;  %v413_v50 = vpop.permute.xlu0 %412 }
 0x23b   :  { %v2779_v22 = vsel %vm380_vm2, %v388_v14, 0.0  ;;  %v405_v24 = vsel %vm380_vm2, %v389_v15, 0.0  ;;  %v406_v25 = vsel %vm380_vm2, %v390_v16, 0.0  ;;  %v407_v26 = vsel %vm380_vm2, %v391_v17, 0.0 }
 0x23c   :  { %v408_v27 = vsel %vm380_vm2, %v392_v18, 0.0  ;;  %v409_v28 = vsel %vm380_vm2, %v393_v19, 0.0  ;;  %v463_v29 = vrot.slane %v402_v20, 7  ;;  %v464_v30 = vrot.slane %v403_v21, 7 }
 0x23d   :  { %v465_v31 = vrot.slane %v2779_v22, 7  ;;  %v466_v32 = vrot.slane %v405_v24, 7  ;;  %v467_v35 = vrot.slane %v406_v25, 7  ;;  %v468_v36 = vrot.slane %v407_v26, 7 }
 0x23e   :  { %v469_v37 = vrot.slane %v408_v27, 7  ;;  %v470_v38 = vrot.slane %v409_v28, 7  ;;  %v2794_v39 = vsel %vm380_vm2, %v440_v6, %v463_v29  ;;  %v2799_v40 = vsel %vm380_vm2, %v2763_v4, %v464_v30 }
 0x23f   :  { %v2803_v41 = vsel %vm380_vm2, %v442_v8, %v466_v32  ;;  %v2807_v42 = vsel %vm380_vm2, %v443_v9, %v467_v35  ;;  %v2811_v43 = vsel %vm380_vm2, %v444_v10, %v468_v36  ;;  %v563_v44 = vrot.slane %v2794_v39, 7 }
 0x240   :  { %v2816_v46 = vsel %vm380_vm2, %v445_v11, %v469_v37  ;;  %v2820_v47 = vsel %vm380_vm2, %v446_v12, %v470_v38  ;;  %v564_v48 = vrot.slane %v2799_v40, 7  ;;  %v566_v49 = vrot.slane %v2803_v41, 7 }
 0x241   :  { %v567_v51 = vrot.slane %v2807_v42, 7  ;;  %v568_v54 = vrot.slane %v2811_v43, 7  ;;  %v569_v55 = vrot.slane %v2816_v46, 7  ;;  %v570_v56 = vrot.slane %v2820_v47, 7 }
 0x242   :  { %v490_v57 = vrot.slane %v489_v45, 7  ;;  %v491_v58 = vrot.slane %v489_v45, 1  ;;  %v492_v59 = vrot.slane %v489_v45, 2  ;;  %v493_v60 = vrot.slane %v489_v45, 3 }
 0x243   :  { %v494_v61 = vrot.slane %v489_v45, 4  ;;  %v495_v5 = vrot.slane %v489_v45, 5  ;;  %v496_v6 = vrot.slane %v489_v45, 6  ;;  %v414_v8 = vrot.slane %v413_v50, 1 }
 0x244   :  { %v415_v9 = vrot.slane %v413_v50, 2  ;;  %v416_v10 = vrot.slane %v413_v50, 3  ;;  %v417_v11 = vrot.slane %v413_v50, 4  ;;  %v418_v12 = vrot.slane %v413_v50, 5 }
 0x245   :  { %v419_v13 = vrot.slane %v413_v50, 6  ;;  %v420_v14 = vrot.slane %v413_v50, 7  ;;  %v429_v15 = vsel %vm380_vm2, %v413_v50, 0.0  ;;  %v430_v16 = vsel %vm380_vm2, %v414_v8, 0.0 }
 0x246   :  { %v431_v17 = vsel %vm380_vm2, %v415_v9, 0.0  ;;  %v432_v18 = vsel %vm380_vm2, %v416_v10, 0.0  ;;  %v433_v19 = vsel %vm380_vm2, %v417_v11, 0.0  ;;  %v434_v20 = vsel %vm380_vm2, %v418_v12, 0.0  ;;  %v589_v10 = vpop.permute.xlu1 %588 }
 0x247   :  { %v435_v21 = vsel %vm380_vm2, %v419_v13, 0.0  ;;  %v436_v24 = vsel %vm380_vm2, %v420_v14, 0.0  ;;  %v513_v25 = vrot.slane %v429_v15, 7  ;;  %v514_v26 = vrot.slane %v430_v16, 7 }
 0x248   :  { %v515_v27 = vrot.slane %v431_v17, 7  ;;  %v516_v28 = vrot.slane %v432_v18, 7  ;;  %v517_v29 = vrot.slane %v433_v19, 7  ;;  %v518_v30 = vrot.slane %v434_v20, 7 }
 0x249   :  { %v519_v32 = vrot.slane %v435_v21, 7  ;;  %v520_v35 = vrot.slane %v436_v24, 7  ;;  %v529_v36 = vsel %vm380_vm2, %v490_v57, %v513_v25  ;;  %v530_v37 = vsel %vm380_vm2, %v489_v45, %v514_v26 }
 0x24a   :  { %v532_v38 = vsel %vm380_vm2, %v492_v59, %v516_v28  ;;  %v533_v50 = vsel %vm380_vm2, %v493_v60, %v517_v29  ;;  %v534_v8 = vsel %vm380_vm2, %v494_v61, %v518_v30  ;;  %v613_v9 = vrot.slane %v529_v36, 7  ;;  %v539_v29 = vpop.permute.xlu0 %538 }
 0x24b   :  { %v535_v11 = vsel %vm380_vm2, %v495_v5, %v519_v32  ;;  %v536_v57 = vsel %vm380_vm2, %v496_v6, %v520_v35  ;;  %v614_v12 = vrot.slane %v530_v37, 7  ;;  %v616_v13 = vrot.slane %v532_v38, 7 }
 0x24c   :  { %v617_v45 = vrot.slane %v533_v50, 7  ;;  %v618_v14 = vrot.slane %v534_v8, 7  ;;  %v619_v15 = vrot.slane %v535_v11, 7  ;;  %v620_v59 = vrot.slane %v536_v57, 7 }
 0x24d   :  { %v531_v60 = vsel %vm380_vm2, %v491_v58, %v515_v27  ;;  %v590_v16 = vrot.slane %v589_v10, 6  ;;  %v591_v17 = vrot.slane %v589_v10, 7  ;;  %v592_v61 = vrot.slane %v589_v10, 1 }
 0x24e   :  { %v593_v18 = vrot.slane %v589_v10, 2  ;;  %v594_v19 = vrot.slane %v589_v10, 3  ;;  %v595_v20 = vrot.slane %v589_v10, 4  ;;  %v596_v21 = vrot.slane %v589_v10, 5 }
 0x24f   :  { %v615_v5 = vrot.slane %v531_v60, 7  ;;  %v2862_v6 = vsel %vm380_vm2, %v590_v16, %v613_v9  ;;  %v2866_v24 = vsel %vm380_vm2, %v591_v17, %v614_v12  ;;  %v2870_v25 = vsel %vm380_vm2, %v592_v61, %v616_v13 }
 0x250   :  { %v2874_v58 = vsel %vm380_vm2, %v593_v18, %v617_v45  ;;  %v2878_v26 = vsel %vm380_vm2, %v594_v19, %v618_v14  ;;  %v2882_v27 = vsel %vm380_vm2, %v595_v20, %v619_v15  ;;  %v2886_v28 = vsel %vm380_vm2, %v596_v21, %v620_v59  ;;  %v639_v15 = vpop.permute.xlu1 %638 }
 0x251   :  { %v2890_v30 = vsel %vm380_vm2, %v589_v10, %v615_v5  ;;  %v713_v32 = vrot.slane %v2862_v6, 7  ;;  %v714_v35 = vrot.slane %v2866_v24, 7  ;;  %v717_v36 = vrot.slane %v2874_v58, 7 }
 0x252   :  { %v715_v37 = vrot.slane %v2890_v30, 7  ;;  %v718_v38 = vrot.slane %v2878_v26, 7  ;;  %v719_v50 = vrot.slane %v2882_v27, 7  ;;  %v481_v8 = vsel %vm380_vm2, %v441_v7, %v465_v31 }
 0x253   :  { %v565_v9 = vrot.slane %v481_v8, 7  ;;  %v540_v10 = vrot.slane %v539_v29, 6  ;;  %v541_v11 = vrot.slane %v539_v29, 7  ;;  %v542_v57 = vrot.slane %v539_v29, 1 }
 0x254   :  { %v543_v12 = vrot.slane %v539_v29, 2  ;;  %v544_v13 = vrot.slane %v539_v29, 3  ;;  %v545_v45 = vrot.slane %v539_v29, 4  ;;  %v546_v14 = vrot.slane %v539_v29, 5 }
 0x255   :  { %v579_v22 = vsel %vm380_vm2, %v540_v10, %v563_v44  ;;  %v580_v4 = vsel %vm380_vm2, %v541_v11, %v564_v48  ;;  %v581_v7 = vsel %vm380_vm2, %v539_v29, %v565_v9  ;;  %v582_v31 = vsel %vm380_vm2, %v542_v57, %v566_v49 }
 0x256   :  { %v583_v39 = vsel %vm380_vm2, %v543_v12, %v567_v51  ;;  %v584_v40 = vsel %vm380_vm2, %v544_v13, %v568_v54  ;;  %v585_v41 = vsel %vm380_vm2, %v545_v45, %v569_v55  ;;  %v586_v44 = vsel %vm380_vm2, %v546_v14, %v570_v56  ;;  %v689_v56 = vpop.permute.xlu0 %688 }
 0x257   :  { %v663_v48 = vrot.slane %v579_v22, 7  ;;  %v664_v42 = vrot.slane %v580_v4, 7  ;;  %v665_v49 = vrot.slane %v581_v7, 7  ;;  %v667_v59 = vrot.slane %v583_v39, 7 }
 0x258   :  { %v668_v51 = vrot.slane %v584_v40, 7  ;;  %v669_v60 = vrot.slane %v585_v41, 7  ;;  %v670_v43 = vrot.slane %v586_v44, 7  ;;  %v640_v16 = vrot.slane %v639_v15, 5 }
 0x259   :  { %v641_v17 = vrot.slane %v639_v15, 6  ;;  %v642_v54 = vrot.slane %v639_v15, 7  ;;  %v643_v61 = vrot.slane %v639_v15, 1  ;;  %v644_v46 = vrot.slane %v639_v15, 2 }
 0x25a   :  { %v645_v18 = vrot.slane %v639_v15, 3  ;;  %v646_v55 = vrot.slane %v639_v15, 4  ;;  %v666_v19 = vrot.slane %v582_v31, 7  ;;  %v679_v47 = vsel %vm380_vm2, %v640_v16, %v663_v48 }
 0x25b   :  { %v680_v20 = vsel %vm380_vm2, %v641_v17, %v664_v42  ;;  %v681_v21 = vsel %vm380_vm2, %v642_v54, %v665_v49  ;;  %v683_v5 = vsel %vm380_vm2, %v643_v61, %v667_v59  ;;  %v684_v29 = vsel %vm380_vm2, %v644_v46, %v668_v51 }
 0x25c   :  { %v682_v8 = vsel %vm380_vm2, %v639_v15, %v666_v19  ;;  %v745_v9 = vrot.slane %v679_v47, 3  ;;  %v746_v10 = vrot.slane %v680_v20, 2  ;;  %v749_v11 = vrot.slane %v681_v21, 1  ;;  %v2174_v21 = vld [vmem:[%s3586_s5] ss:$0 sm:$0xff] }
 0x25d   :  { %v754_v57 = vrot.slane %v683_v5, 7  ;;  %v757_v12 = vrot.slane %v684_v29, 6  ;;  %v716_v13 = vrot.slane %v2870_v25, 7  ;;  %v690_v45 = vrot.slane %v689_v56, 5 }
 0x25e   :  { %v748_v14 = vsel %vm747_vm3, %v746_v10, %v745_v9  ;;  %v691_v22 = vrot.slane %v689_v56, 6  ;;  %v692_v4 = vrot.slane %v689_v56, 7  ;;  %v693_v7 = vrot.slane %v689_v56, 1 }
 0x25f   :  { %v751_v31 = vsel %vm750_vm4, %v749_v11, %v748_v14  ;;  %v694_v39 = vrot.slane %v689_v56, 2  ;;  %v695_v40 = vrot.slane %v689_v56, 3  ;;  %v696_v41 = vrot.slane %v689_v56, 4 }
 0x260   :  { %v753_v15 = vsel %vm752_vm5, %v682_v8, %v751_v31  ;;  %v729_v44 = vsel %vm380_vm2, %v690_v45, %v713_v32  ;;  %v730_v25 = vsel %vm380_vm2, %v691_v22, %v714_v35  ;;  %v731_v48 = vsel %vm380_vm2, %v692_v4, %v715_v37 }
 0x261   :  { %v732_v42 = vsel %vm380_vm2, %v689_v56, %v716_v13  ;;  %v733_v6 = vsel %vm380_vm2, %v693_v7, %v717_v36  ;;  %v776_v49 = vrot.slane %v729_v44, 3  ;;  %v777_v32 = vrot.slane %v730_v25, 2 }
 0x262   :  { %v779_v59 = vrot.slane %v731_v48, 1  ;;  %v782_v24 = vrot.slane %v733_v6, 7  ;;  %v685_v35 = vsel %vm380_vm2, %v645_v18, %v669_v60  ;;  %v686_v30 = vsel %vm380_vm2, %v646_v55, %v670_v43 }
 0x263   :  { %v778_v37 = vsel %vm747_vm3, %v777_v32, %v776_v49  ;;  %v720_v51 = vrot.slane %v2886_v28, 7  ;;  %v734_v58 = vsel %vm380_vm2, %v694_v39, %v718_v38  ;;  %v735_v36 = vsel %vm380_vm2, %v695_v40, %v719_v50  ;;  %v2465_v49 = vld [vmem:[%s3587_s13 + $0x18] sm:$0xff]   ;;  %v2466_v32 = vld [vmem:[%s3587_s13 + $0x10] sm:$0xff]  }
 0x264   :  { %v780_v16 = vsel %vm750_vm4, %v779_v59, %v778_v37  ;;  %v756_v60 = vsel %vm755_vm6, %v754_v57, %v753_v15  ;;  %v760_v17 = vrot.slane %v685_v35, 5  ;;  %v763_v43 = vrot.slane %v686_v30, 4  ;;  %v2467_v59 = vld [vmem:[%s3587_s13 + $0x8] sm:$0xff]   ;;  %v3055_v30 = vld [vmem:[%s3588_s16] sm:$0xff]  }
 0x265   :  { %v781_v54 = vsel %vm752_vm5, %v732_v42, %v780_v16  ;;  %v736_v28 = vsel %vm380_vm2, %v696_v41, %v720_v51  ;;  %v759_v26 = vsel %vm758_vm7, %v757_v12, %v756_v60  ;;  %v784_v61 = vrot.slane %v734_v58, 6  ;;  %v3049_v35 = vld [vmem:[%s3588_s16 + $0x8] sm:$0xff]   ;;  %v3063_v37 = vld [vmem:[%s3589_s12] sm:$0xf] }
 0x266   :  { %v762_v38 = vsel %vm761_vm8, %v760_v17, %v759_v26  ;;  %v783_v27 = vsel %vm755_vm6, %v782_v24, %v781_v54  ;;  %v786_v46 = vrot.slane %v735_v36, 5  ;;  %v788_v55 = vrot.slane %v736_v28, 4  ;;  %v2468_v24 = vld [vmem:[%s3587_s13] sm:$0xff]  }
 0x267   :  { %v765_v50 = vsel %vm764_vm9, %v763_v43, %v762_v38  ;;  %v785_v18 = vsel %vm758_vm7, %v784_v61, %v783_v27  ;;  %vm1046_vm10 = vcmp.gt.f32.partialorder %v3063_v37, 0.5 }
 0x268   :  { %v767_v19 = vmul.f32 %v765_v50, %v2680_v23  ;;  %v787_v47 = vsel %vm761_vm8, %v786_v46, %v785_v18 }
 0x269   :  { %v789_v56 = vsel %vm764_vm9, %v788_v55, %v787_v47 }
 0x26a   :  { %v791_v20 = vadd.f32 %v789_v56, %v767_v19 }
 0x26c   :  { %v798_v5 = vmul.f32 %v2173_v3, %v791_v20 }
 0x26e   :  { %v805_v29 = vadd.f32 %v2174_v21, %v798_v5 }
 0x270   :  { %v806_v8 = vmul.f32 0.01, %v805_v29 }
 0x272   :  { %v807_v9 = vmax.f32 %v805_v29, %v806_v8 }
 0x274   :  { %v808_v10 = vpack.c.bf16 %v807_v9, %v807_v9 }
 0x276   :  { %2348 = vmatmul.mubr.bf16.vlgmr.msra.gmra.mxu0 %v808_v10 }
 0x277   :  { %2383 = vmatprep.mubr.msk.bf16.mxu0 %vm2480_vm0, %v2479_v0  ;;  %2376 = vmatpush3.bf16.msra.mxu0 %v2465_v49 }
 0x278   :  { %2377 = vmatprep.subr.bf16.mxu0 %v2479_v0 }
 0x27b   :  { %2378 = vmatpush3.bf16.msra.mxu0 %v2466_v32 }
 0x27c   :  { %2379 = vmatprep.subr.bf16.mxu0 %v2479_v0 }
 0x27f   :  { %2380 = vmatpush3.bf16.msra.mxu0 %v2467_v59 }
 0x280   :  { %2381 = vmatprep.subr.bf16.mxu0 %v2479_v0 }
 0x283   :  { %2382 = vmatpush3.bf16.msra.mxu0 %v2468_v24 }
 0x284   :  { %2403 = vmatprep.subr.bf16.mxu0 %v2479_v0 }
 0x336   :  { %v3003_v23 = vpop.f32.mrf.mxu0 }
 0x337   :  { %v924_v11 = vpack.c.bf16 %v3003_v23, %v3003_v23  ;;  %v925_v45 = vmul.f32 %v3003_v23, %v3003_v23 }
 0x338   :  { %v2349_v57 = vpop.f32.mrf.mxu0 }
 0x339   :  { %2360 = vmatmul.mubr.msk.bf16.vlgmr.msra.gmra.mxu1 %vm110_vm1, %v924_v11 }
 0x33a   :  { %2364 = vmatpush3.bf16.msra.mxu1 %v2732_v62  ;;  %v910_v12 = vpop.f32.mrf.mxu0  ;;  %2371 = vmatprep.mubr.msk.bf16.mxu1 %vm2480_vm0, %v2479_v0  ;;  %v926_v62 = vpack.c.bf16 %v925_v45, %v925_v45 }
 0x33b   :  { %2365 = vmatprep.subr.bf16.mxu1 %v2479_v0 }
 0x33c   :  { %v2350_v13 = vpop.f32.mrf.mxu0 }
 0x33e   :  { %2366 = vmatpush3.bf16.msra.mxu1 %v2739_v63 }
 0x33f   :  { %2367 = vmatprep.subr.bf16.mxu1 %v2479_v0 }
 0x342   :  { %2368 = vmatpush3.bf16.msra.mxu1 %v2746_v1 }
 0x343   :  { %2369 = vmatprep.subr.bf16.mxu1 %v2479_v0 }
 0x346   :  { %2370 = vmatpush3.bf16.msra.mxu1 %v2753_v2 }
 0x347   :  { %2387 = vmatprep.subr.bf16.mxu1 %v2479_v0 }
 0x349   :  { %2372 = vmatmul.mubr.msk.bf16.vlgmr.msra.gmra.mxu1 %vm110_vm1, %v926_v62 }
 0x34a   :  { %2391 = vmatprep.mubr.msk.bf16.mxu1 %vm2480_vm0, %v2479_v0  ;;  %2388 = vmatpush3.bf16.msra.mxu1 %v3049_v35 }
 0x34b   :  { %2389 = vmatprep.subr.bf16.mxu1 %v2479_v0 }
 0x34e   :  { %2390 = vmatpush3.bf16.msra.mxu1 %v3055_v30 }
 0x34f   :  { %2395 = vmatprep.subr.bf16.mxu1 %v2479_v0 }
 0x3f9   :  { %v988_v63 = vpop.f32.mrf.mxu1 }
 0x3fa   :  { %v1037_v1 = vmul.f32 0.0625, %v988_v63 }
 0x3fb   :  { %v2361_v14 = vpop.f32.mrf.mxu1 }
 0x3fc   :  { %v1039_v31 = vmul.f32 %v1037_v1, %v1037_v1  ;;  %v1044_v42 = vsub.f32 0.0, %v1037_v1 }
 0x3fd   :  { %v991_v22 = vpop.f32.mrf.mxu1 }
 0x3ff   :  { %v2362_v4 = vpop.f32.mrf.mxu1 }
 0x409   :  { %v1031_v7 = vpop.f32.mrf.mxu1 }
 0x40a   :  { %v1038_v39 = vmul.f32 0.0625, %v1031_v7 }
 0x40b   :  { %v2373_v40 = vpop.f32.mrf.mxu1 }
 0x40c   :  { %v1040_v41 = vsub.f32 %v1038_v39, %v1039_v31 }
 0x40d   :  { %v1034_v15 = vpop.f32.mrf.mxu1 }
 0x40e   :  { %v1041_v2 = vmax.f32 %v1040_v41, 0.0 }
 0x40f   :  { %v2374_v44 = vpop.f32.mrf.mxu1 }
 0x410   :  { %v1042_v25 = vadd.f32 1e-05, %v1041_v2 }
 0x412   :  { %2475 = vrsqrt.f32 %v1042_v25 }
 0x41f   :  { %v2476_v48 = vpop.eup %2475 }
 0x420   :  { %1104 = vperm.xlu0 %2424, %v2476_v48   ;;  %1051 = vperm.xlu1 %2423, %v2476_v48   ;;  %v1045_v6 = vmul.f32 %v2476_v48, %v1044_v42 }
 0x424   :  { %2428 = vset.pattern.permute.xlu0 %v2483_v52  ;;  %2425 = vset.pattern.permute.xlu1 %v2483_v52 }
 0x425   :  { %1204 = vperm.xlu1 %2425, %v2476_v48   ;;  %1254 = vperm.xlu0 %2428, %v1045_v6  }
 0x429   :  { %2426 = vset.pattern.permute.xlu1 %v2482_v34  ;;  %2430 = vset.pattern.permute.xlu0 %v2482_v34 }
 0x42a   :  { %1078 = vperm.xlu1 %2426, %v1045_v6  }
 0x42e   :  { %2427 = vset.pattern.permute.xlu1 %v2481_v33 }
 0x42f   :  { %1154 = vperm.xlu1 %2427, %v1045_v6  }
 0x433   :  { %2429 = vset.pattern.permute.xlu1 %v2484_v53 }
 0x434   :  { %1304 = vperm.xlu1 %2429, %v2476_v48  }
 0x438   :  { %1354 = vperm.xlu1 %2429, %v1045_v6  }
 0x43c   :  { %2431 = vset.pattern.permute.xlu1 %v2481_v33 }
 0x49b   :  { %v1105_v51 = vpop.permute.xlu0 %1104  ;;  %v1052_v58 = vpop.permute.xlu1 %1051 }
 0x49c   :  { %v1106_v36 = vrot.slane %v1105_v51, 7  ;;  %v1107_v16 = vrot.slane %v1105_v51, 1  ;;  %v1108_v60 = vrot.slane %v1105_v51, 2  ;;  %v1109_v17 = vrot.slane %v1105_v51, 3 }
 0x49d   :  { %v1110_v43 = vrot.slane %v1105_v51, 4  ;;  %v1111_v54 = vrot.slane %v1105_v51, 5  ;;  %v1112_v28 = vrot.slane %v1105_v51, 6  ;;  %v1053_v26 = vrot.slane %v1052_v58, 1 }
 0x49e   :  { %v1054_v61 = vrot.slane %v1052_v58, 2  ;;  %v1055_v38 = vrot.slane %v1052_v58, 3  ;;  %v1056_v27 = vrot.slane %v1052_v58, 4  ;;  %v1057_v46 = vrot.slane %v1052_v58, 5 }
 0x49f   :  { %v1058_v50 = vrot.slane %v1052_v58, 6  ;;  %v1059_v18 = vrot.slane %v1052_v58, 7  ;;  %v1068_v55 = vsel %vm1046_vm10, %v1052_v58, 0.0  ;;  %v1069_v19 = vsel %vm1046_vm10, %v1053_v26, 0.0 }
 0x4a0   :  { %v1070_v47 = vsel %vm1046_vm10, %v1054_v61, 0.0  ;;  %v1071_v3 = vsel %vm1046_vm10, %v1055_v38, 0.0  ;;  %v1072_v56 = vsel %vm1046_vm10, %v1056_v27, 0.0  ;;  %v1073_v20 = vsel %vm1046_vm10, %v1057_v46, 0.0  ;;  %v1205_v1 = vpop.permute.xlu1 %1204 }
 0x4a1   :  { %v1074_v21 = vsel %vm1046_vm10, %v1058_v50, 0.0  ;;  %v1075_v5 = vsel %vm1046_vm10, %v1059_v18, 0.0  ;;  %v1129_v29 = vrot.slane %v1068_v55, 7  ;;  %v1130_v8 = vrot.slane %v1069_v19, 7 }
 0x4a2   :  { %v1131_v9 = vrot.slane %v1070_v47, 7  ;;  %v1132_v10 = vrot.slane %v1071_v3, 7  ;;  %v1133_v11 = vrot.slane %v1072_v56, 7  ;;  %v1134_v57 = vrot.slane %v1073_v20, 7 }
 0x4a3   :  { %v1135_v12 = vrot.slane %v1074_v21, 7  ;;  %v1136_v13 = vrot.slane %v1075_v5, 7  ;;  %v1145_v45 = vsel %vm1046_vm10, %v1106_v36, %v1129_v29  ;;  %v1146_v62 = vsel %vm1046_vm10, %v1105_v51, %v1130_v8 }
 0x4a4   :  { %v1148_v63 = vsel %vm1046_vm10, %v1108_v60, %v1132_v10  ;;  %v1149_v14 = vsel %vm1046_vm10, %v1109_v17, %v1133_v11  ;;  %v1150_v22 = vsel %vm1046_vm10, %v1110_v43, %v1134_v57  ;;  %v1229_v4 = vrot.slane %v1145_v45, 7 }
 0x4a5   :  { %v1151_v7 = vsel %vm1046_vm10, %v1111_v54, %v1135_v12  ;;  %v1152_v31 = vsel %vm1046_vm10, %v1112_v28, %v1136_v13  ;;  %v1230_v39 = vrot.slane %v1146_v62, 7  ;;  %v1232_v40 = vrot.slane %v1148_v63, 7  ;;  %v3126_v28 = vpop.permute.xlu0 %1254  ;;  %v1079_v26 = vpop.permute.xlu1 %1078 }
 0x4a6   :  { %v1233_v41 = vrot.slane %v1149_v14, 7  ;;  %v1234_v15 = vrot.slane %v1150_v22, 7  ;;  %v1235_v2 = vrot.slane %v1151_v7, 7  ;;  %v1236_v44 = vrot.slane %v1152_v31, 7 }
 0x4a7   :  { %v1147_v25 = vsel %vm1046_vm10, %v1107_v16, %v1131_v9  ;;  %v1206_v48 = vrot.slane %v1205_v1, 6  ;;  %v1207_v42 = vrot.slane %v1205_v1, 7  ;;  %v1208_v6 = vrot.slane %v1205_v1, 1 }
 0x4a8   :  { %v1231_v49 = vrot.slane %v1147_v25, 7  ;;  %v1209_v32 = vrot.slane %v1205_v1, 2  ;;  %v1210_v59 = vrot.slane %v1205_v1, 3  ;;  %v1211_v24 = vrot.slane %v1205_v1, 4 }
 0x4a9   :  { %v1212_v51 = vrot.slane %v1205_v1, 5  ;;  %v3100_v58 = vsel %vm1046_vm10, %v1206_v48, %v1229_v4  ;;  %v3104_v36 = vsel %vm1046_vm10, %v1207_v42, %v1230_v39  ;;  %v3130_v61 = vsel %vm1046_vm10, %v1208_v6, %v1232_v40 }
 0x4aa   :  { %v3108_v60 = vsel %vm1046_vm10, %v1205_v1, %v1231_v49  ;;  %v3112_v16 = vsel %vm1046_vm10, %v1209_v32, %v1233_v41  ;;  %v3116_v17 = vsel %vm1046_vm10, %v1210_v59, %v1234_v15  ;;  %v3120_v43 = vsel %vm1046_vm10, %v1211_v24, %v1235_v2  ;;  %v1155_v62 = vpop.permute.xlu1 %1154 }
 0x4ab   :  { %v3124_v54 = vsel %vm1046_vm10, %v1212_v51, %v1236_v44  ;;  %v1329_v38 = vrot.slane %v3100_v58, 7  ;;  %v1330_v27 = vrot.slane %v3104_v36, 7  ;;  %v1331_v46 = vrot.slane %v3108_v60, 7 }
 0x4ac   :  { %v1333_v50 = vrot.slane %v3112_v16, 7  ;;  %v1334_v18 = vrot.slane %v3116_v17, 7  ;;  %v1335_v55 = vrot.slane %v3120_v43, 7  ;;  %v1336_v19 = vrot.slane %v3124_v54, 7 }
 0x4ad   :  { %v1256_v47 = vrot.slane %v3126_v28, 6  ;;  %v1257_v3 = vrot.slane %v3126_v28, 7  ;;  %v1080_v56 = vrot.slane %v1079_v26, 1  ;;  %v1081_v20 = vrot.slane %v1079_v26, 2 }
 0x4ae   :  { %v1082_v21 = vrot.slane %v1079_v26, 3  ;;  %v1083_v5 = vrot.slane %v1079_v26, 4  ;;  %v1084_v29 = vrot.slane %v1079_v26, 5  ;;  %v1085_v8 = vrot.slane %v1079_v26, 6 }
 0x4af   :  { %v1086_v9 = vrot.slane %v1079_v26, 7  ;;  %v1095_v10 = vsel %vm1046_vm10, %v1079_v26, 0.0  ;;  %v1096_v11 = vsel %vm1046_vm10, %v1080_v56, 0.0  ;;  %v1097_v57 = vsel %vm1046_vm10, %v1081_v20, 0.0  ;;  %v1305_v20 = vpop.permute.xlu1 %1304 }
 0x4b0   :  { %v1098_v12 = vsel %vm1046_vm10, %v1082_v21, 0.0  ;;  %v1099_v13 = vsel %vm1046_vm10, %v1083_v5, 0.0  ;;  %v1100_v45 = vsel %vm1046_vm10, %v1084_v29, 0.0  ;;  %v1258_v63 = vrot.slane %v3126_v28, 1 }
 0x4b1   :  { %v1259_v14 = vrot.slane %v3126_v28, 2  ;;  %v1101_v22 = vsel %vm1046_vm10, %v1085_v8, 0.0  ;;  %v1180_v4 = vrot.slane %v1096_v11, 7  ;;  %v1102_v1 = vsel %vm1046_vm10, %v1086_v9, 0.0 }
 0x4b2   :  { %v1179_v7 = vrot.slane %v1095_v10, 7  ;;  %v1181_v31 = vrot.slane %v1097_v57, 7  ;;  %v1182_v39 = vrot.slane %v1098_v12, 7  ;;  %v1183_v40 = vrot.slane %v1099_v13, 7 }
 0x4b3   :  { %v1184_v41 = vrot.slane %v1100_v45, 7  ;;  %v1156_v15 = vrot.slane %v1155_v62, 7  ;;  %v1157_v2 = vrot.slane %v1155_v62, 1  ;;  %v1158_v44 = vrot.slane %v1155_v62, 2 }
 0x4b4   :  { %v1159_v25 = vrot.slane %v1155_v62, 3  ;;  %v1160_v48 = vrot.slane %v1155_v62, 4  ;;  %v1161_v42 = vrot.slane %v1155_v62, 5  ;;  %v1185_v6 = vrot.slane %v1101_v22, 7 }
 0x4b5   :  { %v1162_v49 = vrot.slane %v1155_v62, 6  ;;  %v1195_v32 = vsel %vm1046_vm10, %v1156_v15, %v1179_v7  ;;  %v1196_v59 = vsel %vm1046_vm10, %v1155_v62, %v1180_v4  ;;  %v1186_v24 = vrot.slane %v1102_v1, 7 }
 0x4b6   :  { %v1197_v51 = vsel %vm1046_vm10, %v1157_v2, %v1181_v31  ;;  %v1198_v26 = vsel %vm1046_vm10, %v1158_v44, %v1182_v39  ;;  %v1199_v56 = vsel %vm1046_vm10, %v1159_v25, %v1183_v40  ;;  %v1260_v21 = vrot.slane %v3126_v28, 3 }
 0x4b7   :  { %v1261_v5 = vrot.slane %v3126_v28, 4  ;;  %v1262_v29 = vrot.slane %v3126_v28, 5  ;;  %v1200_v8 = vsel %vm1046_vm10, %v1160_v48, %v1184_v41  ;;  %v1201_v9 = vsel %vm1046_vm10, %v1161_v42, %v1185_v6 }
 0x4b8   :  { %v3178_v10 = vsel %vm1046_vm10, %v1162_v49, %v1186_v24  ;;  %v1279_v11 = vrot.slane %v1195_v32, 7  ;;  %v1280_v57 = vrot.slane %v1196_v59, 7  ;;  %v1281_v12 = vrot.slane %v1197_v51, 7 }
 0x4b9   :  { %v1282_v13 = vrot.slane %v1198_v26, 7  ;;  %v1283_v45 = vrot.slane %v1199_v56, 7  ;;  %v1306_v62 = vrot.slane %v1305_v20, 5  ;;  %v1284_v22 = vrot.slane %v1200_v8, 7 }
 0x4ba   :  { %v1307_v4 = vrot.slane %v1305_v20, 6  ;;  %v1308_v1 = vrot.slane %v1305_v20, 7  ;;  %v1309_v7 = vrot.slane %v1305_v20, 1  ;;  %v1310_v31 = vrot.slane %v1305_v20, 2 }
 0x4bb   :  { %v1311_v39 = vrot.slane %v1305_v20, 3  ;;  %v1312_v40 = vrot.slane %v1305_v20, 4  ;;  %v1345_v41 = vsel %vm1046_vm10, %v1306_v62, %v1329_v38  ;;  %v1285_v15 = vrot.slane %v1201_v9, 7 }
 0x4bc   :  { %v1296_v2 = vsel %vm1046_vm10, %v1257_v3, %v1280_v57  ;;  %v1346_v44 = vsel %vm1046_vm10, %v1307_v4, %v1330_v27  ;;  %v1347_v25 = vsel %vm1046_vm10, %v1308_v1, %v1331_v46  ;;  %v1286_v48 = vrot.slane %v3178_v10, 7 }
 0x4bd   :  { %v1332_v58 = vrot.slane %v3130_v61, 7  ;;  %v1349_v38 = vsel %vm1046_vm10, %v1309_v7, %v1333_v50  ;;  %v1411_v3 = vrot.slane %v1345_v41, 3  ;;  %v1350_v36 = vsel %vm1046_vm10, %v1310_v31, %v1334_v18 }
 0x4be   :  { %v1351_v60 = vsel %vm1046_vm10, %v1311_v39, %v1335_v55  ;;  %v1412_v27 = vrot.slane %v1346_v44, 2  ;;  %v1414_v46 = vrot.slane %v1347_v25, 1  ;;  %v1380_v42 = vrot.slane %v1296_v2, 7  ;;  %v1355_v55 = vpop.permute.xlu1 %1354 }
 0x4bf   :  { %v1348_v16 = vsel %vm1046_vm10, %v1305_v20, %v1332_v58  ;;  %v1352_v61 = vsel %vm1046_vm10, %v1312_v40, %v1336_v19  ;;  %v1295_v17 = vsel %vm1046_vm10, %v1256_v47, %v1279_v11  ;;  %v1417_v50 = vrot.slane %v1349_v38, 7 }
 0x4c0   :  { %v1413_v43 = vsel %vm747_vm3, %v1412_v27, %v1411_v3  ;;  %v1297_v18 = vsel %vm1046_vm10, %v3126_v28, %v1281_v12  ;;  %v1298_v54 = vsel %vm1046_vm10, %v1258_v63, %v1282_v13  ;;  %v1419_v6 = vrot.slane %v1350_v36, 6 }
 0x4c1   :  { %v1415_v19 = vsel %vm750_vm4, %v1414_v46, %v1413_v43  ;;  %v1421_v49 = vrot.slane %v1351_v60, 5  ;;  %v1299_v47 = vsel %vm1046_vm10, %v1259_v14, %v1283_v45  ;;  %v1300_v59 = vsel %vm1046_vm10, %v1260_v21, %v1284_v22 }
 0x4c2   :  { %v1416_v32 = vsel %vm752_vm5, %v1348_v16, %v1415_v19  ;;  %v1301_v24 = vsel %vm1046_vm10, %v1261_v5, %v1285_v15  ;;  %v1379_v51 = vrot.slane %v1295_v17, 7  ;;  %v1381_v63 = vrot.slane %v1297_v18, 7  ;;  %v2189_v17 = vld [vmem:[%s3590_s9] ss:$0 sm:$0xff] }
 0x4c3   :  { %v1382_v26 = vrot.slane %v1298_v54, 7  ;;  %v1356_v56 = vrot.slane %v1355_v55, 5  ;;  %v1357_v20 = vrot.slane %v1355_v55, 6  ;;  %v1383_v8 = vrot.slane %v1299_v47, 7 }
 0x4c4   :  { %v1358_v9 = vrot.slane %v1355_v55, 7  ;;  %v1359_v10 = vrot.slane %v1355_v55, 1  ;;  %v1360_v11 = vrot.slane %v1355_v55, 2  ;;  %v1418_v57 = vsel %vm755_vm6, %v1417_v50, %v1416_v32  ;;  %v2190_v50 = vld [vmem:[%s3591_s10] ss:$0 sm:$0xff] }
 0x4c5   :  { %v1361_v14 = vrot.slane %v1355_v55, 3  ;;  %v1395_v12 = vsel %vm1046_vm10, %v1356_v56, %v1379_v51  ;;  %v1396_v21 = vsel %vm1046_vm10, %v1357_v20, %v1380_v42  ;;  %v1384_v13 = vrot.slane %v1300_v59, 7 }
 0x4c6   :  { %v1385_v5 = vrot.slane %v1301_v24, 7  ;;  %v1362_v45 = vrot.slane %v1355_v55, 4  ;;  %v1397_v62 = vsel %vm1046_vm10, %v1358_v9, %v1381_v63  ;;  %v1399_v22 = vsel %vm1046_vm10, %v1359_v10, %v1383_v8 }
 0x4c7   :  { %v1435_v4 = vrot.slane %v1395_v12, 3  ;;  %v1436_v1 = vrot.slane %v1396_v21, 2  ;;  %v1438_v7 = vrot.slane %v1397_v62, 1  ;;  %v1423_v31 = vrot.slane %v1352_v61, 4  ;;  %v2471_v62 = vld [vmem:[%s3592_s18 + $0x8] sm:$0xff]  }
 0x4c8   :  { %v1400_v39 = vsel %vm1046_vm10, %v1360_v11, %v1384_v13  ;;  %v1302_v40 = vsel %vm1046_vm10, %v1262_v29, %v1286_v48  ;;  %v1420_v41 = vsel %vm758_vm7, %v1419_v6, %v1418_v57  ;;  %v1401_v15 = vsel %vm1046_vm10, %v1361_v14, %v1385_v5 }
 0x4c9   :  { %v1437_v2 = vsel %vm747_vm3, %v1436_v1, %v1435_v4  ;;  %v1386_v44 = vrot.slane %v1302_v40, 7  ;;  %v1422_v25 = vsel %vm761_vm8, %v1421_v49, %v1420_v41  ;;  %v1398_v58 = vsel %vm1046_vm10, %v1355_v55, %v1382_v26 }
 0x4ca   :  { %v1439_v38 = vsel %vm750_vm4, %v1438_v7, %v1437_v2  ;;  %v1441_v3 = vrot.slane %v1399_v22, 7  ;;  %v1443_v36 = vrot.slane %v1400_v39, 6  ;;  %v1424_v48 = vsel %vm764_vm9, %v1423_v31, %v1422_v25 }
 0x4cb   :  { %v1440_v28 = vsel %vm752_vm5, %v1398_v58, %v1439_v38  ;;  %v1402_v29 = vsel %vm1046_vm10, %v1362_v45, %v1386_v44  ;;  %v1445_v27 = vrot.slane %v1401_v15, 5  ;;  %v1426_v16 = vmul.f32 %v1424_v48, %v3003_v23 }
 0x4cc   :  { %v1442_v60 = vsel %vm755_vm6, %v1441_v3, %v1440_v28  ;;  %v1447_v42 = vrot.slane %v1402_v29, 4 }
 0x4cd   :  { %v1444_v46 = vsel %vm758_vm7, %v1443_v36, %v1442_v60 }
 0x4ce   :  { %v1446_v61 = vsel %vm761_vm8, %v1445_v27, %v1444_v46 }
 0x4cf   :  { %v1448_v43 = vsel %vm764_vm9, %v1447_v42, %v1446_v61 }
 0x4d0   :  { %v1450_v37 = vadd.f32 %v1448_v43, %v1426_v16 }
 0x4d2   :  { %v1457_v18 = vmul.f32 %v2189_v17, %v1450_v37 }
 0x4d4   :  { %v1464_v54 = vadd.f32 %v2190_v50, %v1457_v18 }
 0x4d6   :  { %v1465_v55 = vmul.f32 0.01, %v1464_v54 }
 0x4d8   :  { %v1466_v19 = vmax.f32 %v1464_v54, %v1465_v55 }
 0x4da   :  { %v1467_v6 = vpack.c.bf16 %v1466_v19, %v1466_v19 }
 0x4dc   :  { %2384 = vmatmul.mubr.msk.bf16.vlgmr.msra.gmra.mxu0 %vm110_vm1, %v1467_v6 }
 0x4dd   :  { %2407 = vmatprep.mubr.msk.bf16.mxu0 %vm2480_vm0, %v2479_v0  ;;  %2404 = vmatpush3.bf16.msra.mxu0 %v2471_v62 }
 0x4de   :  { %2405 = vmatprep.subr.bf16.mxu0 %v2479_v0 }
 0x59c   :  { %v3277_v23 = vpop.f32.mrf.mxu0 }
 0x59d   :  { %v1550_v49 = vpack.c.bf16 %v3277_v23, %v3277_v23  ;;  %v1551_v59 = vmul.f32 %v3277_v23, %v3277_v23 }
 0x59e   :  { %v2385_v47 = vpop.f32.mrf.mxu0 }
 0x59f   :  { %2392 = vmatmul.mubr.msk.bf16.vlgmr.msra.gmra.mxu1 %vm1565_vm11, %v1550_v49  ;;  %v1552_v51 = vpack.c.bf16 %v1551_v59, %v1551_v59 }
 0x5a0   :  { %2396 = vmatpush3.bf16.msra.mxu1 %v3049_v35  ;;  %v1540_v32 = vpop.f32.mrf.mxu0  ;;  %2399 = vmatprep.mubr.msk.bf16.mxu1 %vm2480_vm0, %v2479_v0 }
 0x5a1   :  { %2397 = vmatprep.subr.bf16.mxu1 %v2479_v0 }
 0x5a2   :  { %v2386_v24 = vpop.f32.mrf.mxu0 }
 0x5a4   :  { %2398 = vmatpush3.bf16.msra.mxu1 %v3055_v30 }
 0x5a7   :  { %2400 = vmatmul.mubr.msk.bf16.vlgmr.msra.gmra.mxu1 %vm1565_vm11, %v1552_v51 }
 0x65f   :  { %v1603_v63 = vpop.f32.mrf.mxu1 }
 0x660   :  { %v1652_v20 = vmul.f32 0.125, %v1603_v63 }
 0x661   :  { %v2393_v26 = vpop.f32.mrf.mxu1 }
 0x662   :  { %v1654_v9 = vmul.f32 %v1652_v20, %v1652_v20  ;;  %v1659_v30 = vsub.f32 0.0, %v1652_v20 }
 0x663   :  { %v1606_v56 = vpop.f32.mrf.mxu1 }
 0x665   :  { %v2394_v35 = vpop.f32.mrf.mxu1 }
 0x667   :  { %v1646_v8 = vpop.f32.mrf.mxu1 }
 0x668   :  { %v1653_v10 = vmul.f32 0.125, %v1646_v8 }
 0x669   :  { %v2401_v11 = vpop.f32.mrf.mxu1 }
 0x66a   :  { %v1655_v57 = vsub.f32 %v1653_v10, %v1654_v9 }
 0x66b   :  { %v1649_v14 = vpop.f32.mrf.mxu1 }
 0x66c   :  { %v1656_v12 = vmax.f32 %v1655_v57, 0.0 }
 0x66d   :  { %v2402_v21 = vpop.f32.mrf.mxu1 }
 0x66e   :  { %v1657_v13 = vadd.f32 1e-05, %v1656_v12 }
 0x670   :  { %2477 = vrsqrt.f32 %v1657_v13 }
 0x67d   :  { %v2478_v5 = vpop.eup %2477 }
 0x67e   :  { %1719 = vperm.xlu1 %2431, %v2478_v5   ;;  %1666 = vperm.xlu0 %2430, %v2478_v5   ;;  %v1660_v45 = vmul.f32 %v2478_v5, %v1659_v30 }
 0x682   :  { %2432 = vset.pattern.permute.xlu1 %v2482_v34  ;;  %2434 = vset.pattern.permute.xlu0 %v2481_v33  ;;  %v2472_v33 = vld [vmem:[%s3592_s18] sm:$0xff]  }
 0x683   :  { %1769 = vperm.xlu0 %2434, %v1660_v45   ;;  %1693 = vperm.xlu1 %2432, %v1660_v45   ;;  %v3305_v34 = vld [vmem:[%s3593_s17] sm:$0xf] }
 0x684   :  { %2406 = vmatpush3.bf16.msra.mxu0 %v2472_v33  ;;  %vm1661_vm12 = vcmp.gt.f32.partialorder %v3305_v34, 0.5 }
 0x687   :  { %2435 = vset.pattern.permute.xlu0 %v2484_v53  ;;  %2433 = vset.pattern.permute.xlu1 %v2483_v52 }
 0x688   :  { %1919 = vperm.xlu0 %2435, %v2478_v5   ;;  %1819 = vperm.xlu1 %2433, %v2478_v5  }
 0x68c   :  { %1869 = vperm.xlu1 %2433, %v1660_v45  }
 0x690   :  { %2436 = vset.pattern.permute.xlu1 %v2484_v53 }
 0x691   :  { %1969 = vperm.xlu1 %2436, %v1660_v45  }
 0x6f9   :  { %v3307_v52 = vpop.permute.xlu1 %1719  ;;  %v1667_v53 = vpop.permute.xlu0 %1666 }
 0x6fa   :  { %v1721_v22 = vrot.slane %v3307_v52, 7  ;;  %v1723_v4 = vrot.slane %v3307_v52, 2  ;;  %v1724_v1 = vrot.slane %v3307_v52, 3  ;;  %v1725_v7 = vrot.slane %v3307_v52, 4 }
 0x6fb   :  { %v1726_v0 = vrot.slane %v3307_v52, 5  ;;  %v1668_v31 = vrot.slane %v1667_v53, 1  ;;  %v1669_v39 = vrot.slane %v1667_v53, 2  ;;  %v1670_v40 = vrot.slane %v1667_v53, 3 }
 0x6fc   :  { %v1671_v41 = vrot.slane %v1667_v53, 4  ;;  %v1672_v15 = vrot.slane %v1667_v53, 5  ;;  %v1673_v2 = vrot.slane %v1667_v53, 6  ;;  %v1674_v44 = vrot.slane %v1667_v53, 7 }
 0x6fd   :  { %v1683_v25 = vsel %vm1661_vm12, %v1667_v53, 0.0  ;;  %v1684_v58 = vsel %vm1661_vm12, %v1668_v31, 0.0  ;;  %v1727_v38 = vrot.slane %v3307_v52, 6  ;;  %v1686_v3 = vsel %vm1661_vm12, %v1670_v40, 0.0 }
 0x6fe   :  { %v1687_v28 = vsel %vm1661_vm12, %v1671_v41, 0.0  ;;  %v1688_v36 = vsel %vm1661_vm12, %v1672_v15, 0.0  ;;  %v1689_v29 = vsel %vm1661_vm12, %v1673_v2, 0.0  ;;  %v1690_v48 = vsel %vm1661_vm12, %v1674_v44, 0.0  ;;  %v3364_v47 = vpop.permute.xlu0 %1769  ;;  %v1694_v32 = vpop.permute.xlu1 %1693 }
 0x6ff   :  { %v1744_v60 = vrot.slane %v1683_v25, 7  ;;  %v1745_v27 = vrot.slane %v1684_v58, 7  ;;  %v3332_v46 = vsel %vm1661_vm12, %v1669_v39, 0.0  ;;  %v1747_v42 = vrot.slane %v1686_v3, 7 }
 0x700   :  { %v1748_v16 = vrot.slane %v1687_v28, 7  ;;  %v1749_v61 = vrot.slane %v1688_v36, 7  ;;  %v1750_v17 = vrot.slane %v1689_v29, 7  ;;  %v1751_v43 = vrot.slane %v1690_v48, 7 }
 0x701   :  { %v3336_v37 = vsel %vm1661_vm12, %v1721_v22, %v1744_v60  ;;  %v3341_v50 = vsel %vm1661_vm12, %v3307_v52, %v1745_v27  ;;  %v3345_v18 = vsel %vm1661_vm12, %v1723_v4, %v1747_v42  ;;  %v1722_v19 = vrot.slane %v3307_v52, 1 }
 0x702   :  { %v3349_v54 = vsel %vm1661_vm12, %v1724_v1, %v1748_v16  ;;  %v3353_v55 = vsel %vm1661_vm12, %v1725_v7, %v1749_v61  ;;  %v3358_v6 = vsel %vm1661_vm12, %v1726_v0, %v1750_v17  ;;  %v3362_v49 = vsel %vm1661_vm12, %v1727_v38, %v1751_v43 }
 0x703   :  { %v1746_v59 = vrot.slane %v3332_v46, 7  ;;  %v1844_v24 = vrot.slane %v3336_v37, 7  ;;  %v1845_v51 = vrot.slane %v3341_v50, 7  ;;  %v1847_v63 = vrot.slane %v3345_v18, 7  ;;  %v3418_v28 = vpop.permute.xlu0 %1919  ;;  %v1820_v27 = vpop.permute.xlu1 %1819 }
 0x704   :  { %v1848_v26 = vrot.slane %v3349_v54, 7  ;;  %v1849_v56 = vrot.slane %v3353_v55, 7  ;;  %v1850_v20 = vrot.slane %v3358_v6, 7  ;;  %v1851_v35 = vrot.slane %v3362_v49, 7 }
 0x705   :  { %v1771_v8 = vrot.slane %v3364_v47, 7  ;;  %v1774_v9 = vrot.slane %v3364_v47, 3  ;;  %v1775_v10 = vrot.slane %v3364_v47, 4  ;;  %v1695_v11 = vrot.slane %v1694_v32, 1 }
 0x706   :  { %v1696_v57 = vrot.slane %v1694_v32, 2  ;;  %v1697_v14 = vrot.slane %v1694_v32, 3  ;;  %v1698_v12 = vrot.slane %v1694_v32, 4  ;;  %v1699_v21 = vrot.slane %v1694_v32, 5 }
 0x707   :  { %v1700_v13 = vrot.slane %v1694_v32, 6  ;;  %v1701_v5 = vrot.slane %v1694_v32, 7  ;;  %v1710_v30 = vsel %vm1661_vm12, %v1694_v32, 0.0  ;;  %v1711_v45 = vsel %vm1661_vm12, %v1695_v11, 0.0 }
 0x708   :  { %v1776_v62 = vrot.slane %v3364_v47, 5  ;;  %v1777_v33 = vrot.slane %v3364_v47, 6  ;;  %v1714_v52 = vsel %vm1661_vm12, %v1698_v12, 0.0  ;;  %v1715_v53 = vsel %vm1661_vm12, %v1699_v21, 0.0 }
 0x709   :  { %v1716_v22 = vsel %vm1661_vm12, %v1700_v13, 0.0  ;;  %v1717_v4 = vsel %vm1661_vm12, %v1701_v5, 0.0  ;;  %v1794_v1 = vrot.slane %v1710_v30, 7  ;;  %v1795_v7 = vrot.slane %v1711_v45, 7 }
 0x70a   :  { %v3393_v0 = vsel %vm1661_vm12, %v1696_v57, 0.0  ;;  %v3397_v31 = vsel %vm1661_vm12, %v1697_v14, 0.0  ;;  %v1798_v39 = vrot.slane %v1714_v52, 7  ;;  %v1799_v40 = vrot.slane %v1715_v53, 7  ;;  %v1870_v53 = vpop.permute.xlu1 %1869 }
 0x70b   :  { %v1800_v41 = vrot.slane %v1716_v22, 7  ;;  %v1801_v15 = vrot.slane %v1717_v4, 7  ;;  %v3401_v2 = vsel %vm1661_vm12, %v1771_v8, %v1794_v1  ;;  %v3406_v44 = vsel %vm1661_vm12, %v3364_v47, %v1795_v7 }
 0x70c   :  { %v1772_v25 = vrot.slane %v3364_v47, 1  ;;  %v1773_v58 = vrot.slane %v3364_v47, 2  ;;  %v3412_v38 = vsel %vm1661_vm12, %v1774_v9, %v1798_v39  ;;  %v3416_v3 = vsel %vm1661_vm12, %v1775_v10, %v1799_v40 }
 0x70d   :  { %v1796_v36 = vrot.slane %v3393_v0, 7  ;;  %v1797_v29 = vrot.slane %v3397_v31, 7  ;;  %v3424_v48 = vsel %vm1661_vm12, %v1776_v62, %v1800_v41  ;;  %v3428_v60 = vsel %vm1661_vm12, %v1777_v33, %v1801_v15 }
 0x70e   :  { %v1894_v46 = vrot.slane %v3401_v2, 7  ;;  %v1895_v42 = vrot.slane %v3406_v44, 7  ;;  %v1898_v16 = vrot.slane %v3412_v38, 7  ;;  %v1899_v61 = vrot.slane %v3416_v3, 7 }
 0x70f   :  { %v1900_v17 = vrot.slane %v3424_v48, 7  ;;  %v1901_v43 = vrot.slane %v3428_v60, 7  ;;  %v1921_v32 = vrot.slane %v3418_v28, 5  ;;  %v1922_v8 = vrot.slane %v3418_v28, 6 }
 0x710   :  { %v1923_v9 = vrot.slane %v3418_v28, 7  ;;  %v1762_v10 = vsel %vm1661_vm12, %v1722_v19, %v1746_v59  ;;  %v1821_v11 = vrot.slane %v1820_v27, 6  ;;  %v1822_v57 = vrot.slane %v1820_v27, 7 }
 0x711   :  { %v1846_v14 = vrot.slane %v1762_v10, 7  ;;  %v1823_v12 = vrot.slane %v1820_v27, 1  ;;  %v1824_v21 = vrot.slane %v1820_v27, 2  ;;  %v1825_v13 = vrot.slane %v1820_v27, 3 }
 0x712   :  { %v1826_v5 = vrot.slane %v1820_v27, 4  ;;  %v1827_v30 = vrot.slane %v1820_v27, 5  ;;  %v1860_v45 = vsel %vm1661_vm12, %v1821_v11, %v1844_v24  ;;  %v1861_v62 = vsel %vm1661_vm12, %v1822_v57, %v1845_v51 }
 0x713   :  { %v1862_v19 = vsel %vm1661_vm12, %v1820_v27, %v1846_v14  ;;  %v1863_v59 = vsel %vm1661_vm12, %v1823_v12, %v1847_v63  ;;  %v1864_v37 = vsel %vm1661_vm12, %v1824_v21, %v1848_v26  ;;  %v1865_v50 = vsel %vm1661_vm12, %v1825_v13, %v1849_v56 }
 0x714   :  { %v1924_v24 = vrot.slane %v3418_v28, 1  ;;  %v3468_v18 = vsel %vm1661_vm12, %v1826_v5, %v1850_v20  ;;  %v1944_v51 = vrot.slane %v1860_v45, 7  ;;  %v1945_v63 = vrot.slane %v1861_v62, 7  ;;  %v1970_v5 = vpop.permute.xlu1 %1969 }
 0x715   :  { %v3474_v54 = vsel %vm1661_vm12, %v1827_v30, %v1851_v35  ;;  %v1946_v55 = vrot.slane %v1862_v19, 7  ;;  %v1947_v26 = vrot.slane %v1863_v59, 7  ;;  %v1948_v33 = vrot.slane %v1864_v37, 7 }
 0x716   :  { %v1925_v56 = vrot.slane %v3418_v28, 2  ;;  %v1949_v52 = vrot.slane %v1865_v50, 7  ;;  %v1960_v6 = vsel %vm1661_vm12, %v1921_v32, %v1944_v51  ;;  %v1961_v20 = vsel %vm1661_vm12, %v1922_v8, %v1945_v63 }
 0x717   :  { %v1926_v22 = vrot.slane %v3418_v28, 3  ;;  %v1927_v49 = vrot.slane %v3418_v28, 4  ;;  %v1950_v35 = vrot.slane %v3468_v18, 7  ;;  %v1962_v4 = vsel %vm1661_vm12, %v1923_v9, %v1946_v55 }
 0x718   :  { %v1951_v1 = vrot.slane %v3474_v54, 7  ;;  %v1963_v7 = vsel %vm1661_vm12, %v3418_v28, %v1947_v26  ;;  %v3492_v0 = vsel %vm1661_vm12, %v1924_v24, %v1948_v33  ;;  %v2026_v39 = vrot.slane %v1960_v6, 3 }
 0x719   :  { %v2027_v40 = vrot.slane %v1961_v20, 2  ;;  %v1812_v41 = vsel %vm1661_vm12, %v1772_v25, %v1796_v36  ;;  %v1871_v15 = vrot.slane %v1870_v53, 6  ;;  %v1872_v2 = vrot.slane %v1870_v53, 7 }
 0x71a   :  { %v1965_v44 = vsel %vm1661_vm12, %v1925_v56, %v1949_v52  ;;  %v2029_v38 = vrot.slane %v1962_v4, 1  ;;  %v1896_v3 = vrot.slane %v1812_v41, 7  ;;  %v1874_v27 = vrot.slane %v1870_v53, 2 }
 0x71b   :  { %v2032_v32 = vrot.slane %v3492_v0, 7  ;;  %v1875_v8 = vrot.slane %v1870_v53, 3  ;;  %v1876_v9 = vrot.slane %v1870_v53, 4  ;;  %v1877_v10 = vrot.slane %v1870_v53, 5 }
 0x71c   :  { %v1910_v11 = vsel %vm1661_vm12, %v1871_v15, %v1894_v46  ;;  %v1911_v57 = vsel %vm1661_vm12, %v1872_v2, %v1895_v42  ;;  %v1912_v25 = vsel %vm1661_vm12, %v1870_v53, %v1896_v3  ;;  %v1914_v36 = vsel %vm1661_vm12, %v1874_v27, %v1898_v16 }
 0x71d   :  { %v2028_v14 = vsel %vm747_vm3, %v2027_v40, %v2026_v39  ;;  %v2034_v12 = vrot.slane %v1965_v44, 6  ;;  %v1873_v21 = vrot.slane %v1870_v53, 1  ;;  %v1915_v13 = vsel %vm1661_vm12, %v1875_v8, %v1899_v61 }
 0x71e   :  { %v1916_v46 = vsel %vm1661_vm12, %v1876_v9, %v1900_v17  ;;  %v1917_v42 = vsel %vm1661_vm12, %v1877_v10, %v1901_v43  ;;  %v1996_v30 = vrot.slane %v1912_v25, 7  ;;  %v1813_v16 = vsel %vm1661_vm12, %v1773_v58, %v1797_v29  ;;  %v2200_v9 = vld [vmem:[%s3594_s14] ss:$0 sm:$0xff] }
 0x71f   :  { %v1897_v61 = vrot.slane %v1813_v16, 7  ;;  %v1994_v45 = vrot.slane %v1910_v11, 7  ;;  %v1995_v62 = vrot.slane %v1911_v57, 7  ;;  %v1998_v48 = vrot.slane %v1914_v36, 7  ;;  %v2201_v57 = vld [vmem:[%s3595_s15] ss:$0 sm:$0xff] }
 0x720   :  { %v1971_v19 = vrot.slane %v1970_v5, 5  ;;  %v1972_v59 = vrot.slane %v1970_v5, 6  ;;  %v1973_v17 = vrot.slane %v1970_v5, 7  ;;  %v1974_v37 = vrot.slane %v1970_v5, 1 }
 0x721   :  { %v1913_v60 = vsel %vm1661_vm12, %v1873_v21, %v1897_v61  ;;  %v1975_v43 = vrot.slane %v1970_v5, 2  ;;  %v1976_v50 = vrot.slane %v1970_v5, 3  ;;  %v1977_v24 = vrot.slane %v1970_v5, 4 }
 0x722   :  { %v1997_v31 = vrot.slane %v1913_v60, 7  ;;  %v2010_v47 = vsel %vm1661_vm12, %v1971_v19, %v1994_v45  ;;  %v2011_v58 = vsel %vm1661_vm12, %v1972_v59, %v1995_v62  ;;  %v2012_v29 = vsel %vm1661_vm12, %v1973_v17, %v1996_v30 }
 0x723   :  { %v2030_v18 = vsel %vm750_vm4, %v2029_v38, %v2028_v14  ;;  %v1999_v51 = vrot.slane %v1915_v13, 7  ;;  %v2000_v63 = vrot.slane %v1916_v46, 7  ;;  %v2001_v54 = vrot.slane %v1917_v42, 7 }
 0x724   :  { %v2014_v55 = vsel %vm1661_vm12, %v1974_v37, %v1998_v48  ;;  %v2050_v26 = vrot.slane %v2010_v47, 3  ;;  %v2051_v33 = vrot.slane %v2011_v58, 2  ;;  %v2053_v56 = vrot.slane %v2012_v29, 1 }
 0x725   :  { %v2013_v52 = vsel %vm1661_vm12, %v1970_v5, %v1997_v31  ;;  %v2015_v6 = vsel %vm1661_vm12, %v1975_v43, %v1999_v51  ;;  %v2016_v20 = vsel %vm1661_vm12, %v1976_v50, %v2000_v63  ;;  %v2017_v53 = vsel %vm1661_vm12, %v1977_v24, %v2001_v54 }
 0x726   :  { %v2052_v4 = vsel %vm747_vm3, %v2051_v33, %v2050_v26  ;;  %v1966_v0 = vsel %vm1661_vm12, %v1926_v22, %v1950_v35  ;;  %v1967_v39 = vsel %vm1661_vm12, %v1927_v49, %v1951_v1  ;;  %v2031_v40 = vsel %vm752_vm5, %v1963_v7, %v2030_v18 }
 0x727   :  { %v2054_v41 = vsel %vm750_vm4, %v2053_v56, %v2052_v4  ;;  %v2056_v15 = vrot.slane %v2014_v55, 7  ;;  %v2033_v2 = vsel %vm755_vm6, %v2032_v32, %v2031_v40  ;;  %v2036_v44 = vrot.slane %v1966_v0, 5 }
 0x728   :  { %v2055_v38 = vsel %vm752_vm5, %v2013_v52, %v2054_v41  ;;  %v2058_v3 = vrot.slane %v2015_v6, 6  ;;  %v2035_v27 = vsel %vm758_vm7, %v2034_v12, %v2033_v2  ;;  %v2038_v8 = vrot.slane %v1967_v39, 4 }
 0x729   :  { %v2057_v22 = vsel %vm755_vm6, %v2056_v15, %v2055_v38  ;;  %v2060_v28 = vrot.slane %v2016_v20, 5  ;;  %v2037_v34 = vsel %vm761_vm8, %v2036_v44, %v2035_v27  ;;  %v2062_v35 = vrot.slane %v2017_v53, 4 }
 0x72a   :  { %v2059_v49 = vsel %vm758_vm7, %v2058_v3, %v2057_v22  ;;  %v2039_v1 = vsel %vm764_vm9, %v2038_v8, %v2037_v34 }
 0x72b   :  { %v2041_v7 = vmul.f32 %v2039_v1, %v3277_v23  ;;  %v2061_v32 = vsel %vm761_vm8, %v2060_v28, %v2059_v49  ;;  %v2202_v23 = vld [vmem:[%s3596_s19] ss:$0 sm:$0xff] }
 0x72c   :  { %v2063_v10 = vsel %vm764_vm9, %v2062_v35, %v2061_v32 }
 0x72d   :  { %v2065_v11 = vadd.f32 %v2063_v10, %v2041_v7 }
 0x72f   :  { %v2072_v25 = vmul.f32 %v2200_v9, %v2065_v11 }
 0x731   :  { %v2079_v36 = vadd.f32 %v2201_v57, %v2072_v25 }
 0x733   :  { %v2080_v14 = vmul.f32 0.01, %v2079_v36 }
 0x735   :  { %v2081_v12 = vmax.f32 %v2079_v36, %v2080_v14 }
 0x737   :  { %v2082_v21 = vpack.c.bf16 %v2081_v12, %v2081_v12 }
 0x739   :  { %2408 = vmatmul.mubr.msk.bf16.vlgmr.msra.gmra.mxu0 %vm1565_vm11, %v2082_v21 }
 0x7f9   :  { %v2143_v13 = vpop.f32.mrf.mxu0 }
 0x7fa   :  { %v2144_v5 = vadd.f32 %v2202_v23, %v2143_v13 }
 0x7fb   :  { %v2409_v46 = vpop.f32.mrf.mxu0 }
 0x7fc   :  { %2150 = vst.msk [vmem:[%s3597_s20] sm:$0xff] %vm2149_vm13, %v2144_v5 }
 0x7fd   :  { %v2146_v42 = vpop.f32.mrf.mxu0 }
 0x7ff   :  { %v2410_v30 = vpop.f32.mrf.mxu0 }

</bundles_post_ra>
